<compile_context>
chip_gen: v6e
topology: v6e:2x2x1
jax: 0.10.0
libtpu: 0.0.40
codegen_flags: <defaults>
</compile_context>

<pallas_src>
import functools
import numpy as np

import jax
import jax.numpy as jnp
from jax.experimental import pallas as pl
from jax.experimental.pallas import tpu as pltpu


# --------------------------------------------------------------------------
# Pallas kernel
# --------------------------------------------------------------------------
def softcap_kernel(n_cap, dim_hidden,
                   # inputs
                   vid_ref, ua_ref, ba_ref, wa_ref, w_ref, vmask_ref,
                   capemb_ref, hinit_ref,
                   wx1e_ref, w1cat_ref, b1_ref,
                   w2cat_ref, b2_ref,
                   ww_ref, bw_ref, tgt_ref, roww_ref,
                   # outputs
                   loss_ref,
                   # scratch
                   ip_ref, g1e_ref, out2s_ref):
    H = dim_hidden
    f32 = jnp.float32
    bf16 = jnp.bfloat16

    ve = vid_ref[...]                                   # (T, B, H) f32
    T_, B = ve.shape[0], ve.shape[1]

    # ---- image_part = bmm(vid_emb, Ua) + ba, once, into VMEM scratch ----
    ip = jnp.dot(ve.reshape(T_ * B, H).astype(bf16), ua_ref[...],
                 preferred_element_type=f32)
    ip_ref[...] = ip.reshape(T_, B, H) + ba_ref[...][None, :, :]

    # ---- non-recurrent LSTM1 input term for all steps (one big matmul) ----
    ge = jnp.dot(capemb_ref[...], wx1e_ref[...],        # (n_cap*B, H) x (H, 4H)
                 preferred_element_type=f32)
    g1e_ref[...] = ge.reshape(n_cap, B, 4 * H)

    # ---- loop-invariant small values (hoisted broadcasts) ----
    vmask = vmask_ref[...]                              # (T, B)
    watt = w_ref[...]                                   # (1, H)
    b1_full = jnp.broadcast_to(b1_ref[...], (B, 4 * H))
    b2_full = jnp.broadcast_to(b2_ref[...], (B, 4 * H))

    h0 = hinit_ref[...]                                 # (B, H) f32
    zeros_bh = jnp.zeros((B, H), f32)

    def step(i, carry):
        h_prev, out1, st1, out2, st2 = carry

        # ---- temporal attention over video frames ----
        e_i = jnp.tanh(
            jnp.dot(h_prev.astype(bf16), wa_ref[...],
                    preferred_element_type=f32)[None, :, :]
            + ip_ref[...])                              # (T, B, H)
        e_w = jnp.sum(e_i * watt[None, :, :], axis=-1)  # (T, B)
        e_max = jnp.max(e_w, axis=0, keepdims=True)     # (1, B)
        e_hat = vmask * jnp.exp(e_w - e_max)            # (T, B)
        denom = jnp.sum(e_hat, axis=0, keepdims=True)   # (1, B)
        denom = denom + (denom == 0.0).astype(f32) + 1e-9
        e_div = e_hat * pl.reciprocal(denom, approx=True)
        atten = jnp.sum(e_div[:, :, None] * vid_ref[...], axis=0)   # (B, H)

        # ---- LSTM1: fused [atten, out1] @ [Wx1a; Wh1]  (K = 2H) ----
        x1 = jnp.concatenate([atten, out1], axis=1).astype(bf16)    # (B, 2H)
        g1 = (g1e_ref[i]
              + jnp.dot(x1, w1cat_ref[...], preferred_element_type=f32)
              + b1_full)
        i1 = jax.nn.sigmoid(g1[:, 0:H])
        f1 = jax.nn.sigmoid(g1[:, H:2 * H])
        c1 = jnp.tanh(g1[:, 2 * H:3 * H])
        o1 = jax.nn.sigmoid(g1[:, 3 * H:4 * H])
        st1 = f1 * st1 + i1 * c1
        out1 = o1 * jnp.tanh(st1)

        # ---- LSTM2: fused [out1, out2] @ [Wx2; Wh2]  (K = 2H) ----
        x2 = jnp.concatenate([out1, out2], axis=1).astype(bf16)     # (B, 2H)
        g2 = (jnp.dot(x2, w2cat_ref[...], preferred_element_type=f32)
              + b2_full)
        i2 = jax.nn.sigmoid(g2[:, 0:H])
        f2 = jax.nn.sigmoid(g2[:, H:2 * H])
        c2 = jnp.tanh(g2[:, 2 * H:3 * H])
        o2 = jax.nn.sigmoid(g2[:, 3 * H:4 * H])
        st2 = f2 * st2 + i2 * c2
        out2 = o2 * jnp.tanh(st2)

        # stash out2 for the deferred word projection / CE
        out2s_ref[i] = out2

        return (out2, out1, st1, out2, st2)

    jax.lax.fori_loop(0, n_cap, step, (h0, h0, zeros_bh, zeros_bh, zeros_bh))

    # ---- deferred word logits + masked cross entropy over ALL steps ----
    S = n_cap * B
    out2_all = out2s_ref[...].reshape(S, H).astype(bf16)            # (S, H)
    logits = (jnp.dot(out2_all, ww_ref[...], preferred_element_type=f32)
              + bw_ref[...])                                        # (S, V)
    V = logits.shape[1]
    m = jnp.max(logits, axis=1, keepdims=True)                      # (S, 1)
    lse = m + jnp.log(jnp.sum(jnp.exp(logits - m), axis=1, keepdims=True))
    col = jax.lax.broadcasted_iota(jnp.int32, (S, V), 1)
    tsel = (col == tgt_ref[...]).astype(f32)                        # (S, V)
    tgt_logit = jnp.sum(tsel * logits, axis=1, keepdims=True)       # (S, 1)
    ce = lse - tgt_logit                                            # (S, 1)
    # roww[i*B + b] = sum_b' caption_mask[b', i+1] / B^2  (precomputed)
    loss_ref[...] = jnp.sum(ce * roww_ref[...], axis=0, keepdims=True)


# --------------------------------------------------------------------------
# Wrapper: glue (linear encoders, embedding gather, target prep) + pallas_call
# --------------------------------------------------------------------------
def softcap_forward_pallas(p, batch_size, action_feat, video_mask,
                           captions, caption_mask):
    B = batch_size
    H = p["H"]
    n_cap = p["n_cap"]
    T = action_feat.shape[1]
    bf16 = jnp.bfloat16

    # encode_image / encode_mean (plain JAX glue)
    video_feat = action_feat @ p["W_img"].T + p["b_img"]          # (B, T, H)
    vid_emb = jnp.transpose(video_feat, (1, 0, 2)).astype(jnp.float32)  # (T,B,H)
    feat_mean = (jnp.mean(action_feat, axis=1) @ p["W_mean"].T
                 + p["b_mean"]).astype(jnp.float32)               # (B, H)

    # embedding gather for input tokens, flattened step-major, bf16 for MXU
    cap_emb = jnp.transpose(p["Wemb"][captions[:, :n_cap]], (1, 0, 2))
    cap_emb = cap_emb.reshape(n_cap * B, H).astype(bf16)          # (n_cap*B, H)

    # int targets (no dense one-hot) and per-row CE weights
    tgt = captions[:, 1:n_cap + 1].T.reshape(n_cap * B, 1).astype(jnp.int32)
    stepw = jnp.sum(caption_mask[:, 1:n_cap + 1], axis=0) / (B * B)   # (n_cap,)
    roww = jnp.repeat(stepw, B).reshape(n_cap * B, 1).astype(jnp.float32)

    vmask_t = video_mask.T.astype(jnp.float32)                    # (T, B)

    # params shaped / stacked / cast once in the wrapper
    ba2 = p["ba"][None, :].astype(jnp.float32)                    # (1, H)
    w2 = p["w"][:, 0][None, :].astype(jnp.float32)                # (1, H)
    b1 = (p["b_ih1"] + p["b_hh1"])[None, :].astype(jnp.float32)   # (1, 4H)
    b2 = (p["b_ih2"] + p["b_hh2"])[None, :].astype(jnp.float32)   # (1, 4H)
    bw2 = p["bw"][None, :].astype(jnp.float32)                    # (1, V)

    Ua_b = p["Ua"].astype(bf16)
    Wa_b = p["Wa"].astype(bf16)
    Wx1e_b = p["Wx1"][:H, :].astype(bf16)                         # embed part
    W1cat_b = jnp.concatenate([p["Wx1"][H:, :], p["Wh1"]], axis=0).astype(bf16)
    W2cat_b = jnp.concatenate([p["Wx2"], p["Wh2"]], axis=0).astype(bf16)
    Ww_b = p["Ww"].astype(bf16)

    vmem = lambda: pl.BlockSpec(memory_space=pltpu.MemorySpace.VMEM)

    kernel = functools.partial(softcap_kernel, n_cap, H)

    loss = pl.pallas_call(
        kernel,
        out_shape=jax.ShapeDtypeStruct((1, 1), jnp.float32),
        in_specs=[vmem() for _ in range(17)],
        out_specs=pl.BlockSpec(memory_space=pltpu.MemorySpace.VMEM),
        scratch_shapes=[
            pltpu.VMEM((T, B, H), jnp.float32),          # image_part
            pltpu.VMEM((n_cap, B, 4 * H), jnp.float32),  # emb @ Wx1e, all steps
            pltpu.VMEM((n_cap, B, H), jnp.float32),      # out2 per step
        ],
        compiler_params=pltpu.CompilerParams(
            vmem_limit_bytes=32 * 1024 * 1024),
    )(vid_emb, Ua_b, ba2, Wa_b, w2, vmask_t,
      cap_emb, feat_mean,
      Wx1e_b, W1cat_b, b1,
      W2cat_b, b2,
      Ww_b, bw2, tgt, roww)

    # forward(evaluate=False) returns (total_loss, np.array([]).T) — gen_words empty
    return loss[0, 0]


# --------------------------------------------------------------------------
# Pure-JAX reference (mirrors the torch forward, evaluate=False), all f32
# --------------------------------------------------------------------------
def softcap_forward_reference(p, batch_size, action_feat, video_mask,
                              captions, caption_mask):
    B = batch_size
    H = p["H"]
    n_cap = p["n_cap"]

    video_feat = action_feat @ p["W_img"].T + p["b_img"]
    vid_emb = jnp.transpose(video_feat, (1, 0, 2))                # (T, B, H)
    feat_mean = jnp.mean(action_feat, axis=1) @ p["W_mean"].T + p["b_mean"]
    image_part = jnp.einsum("tbh,hk->tbk", vid_emb, p["Ua"]) + p["ba"]
    vmask = video_mask.T.astype(jnp.float32)

    h_prev = feat_mean
    out1 = feat_mean
    st1 = jnp.zeros((B, H), jnp.float32)
    out2 = jnp.zeros((B, H), jnp.float32)
    st2 = jnp.zeros((B, H), jnp.float32)
    total = jnp.float32(0.0)

    for i in range(n_cap):
        e_i = jnp.tanh(h_prev @ p["Wa"] + image_part)             # (T, B, H)
        e_w = jnp.einsum("tbh,h->tb", e_i, p["w"][:, 0])          # (T, B)
        e_max = jnp.max(e_w, axis=0)
        e_hat = vmask * jnp.exp(e_w - e_max)
        denom = jnp.sum(e_hat, axis=0)
        denom = denom + (denom == 0.0).astype(jnp.float32) + 1e-9
        e_div = e_hat / denom
        atten = jnp.sum(e_div[:, :, None] * vid_emb, axis=0)      # (B, H)

        emb = p["Wemb"][captions[:, i]]                           # (B, H)
        x1 = jnp.concatenate([emb, atten], axis=1)                # (B, 2H)
        g1 = x1 @ p["Wx1"] + out1 @ p["Wh1"] + p["b_ih1"] + p["b_hh1"]
        i1 = jax.nn.sigmoid(g1[:, :H]); f1 = jax.nn.sigmoid(g1[:, H:2 * H])
        c1 = jnp.tanh(g1[:, 2 * H:3 * H]); o1 = jax.nn.sigmoid(g1[:, 3 * H:])
        st1 = f1 * st1 + i1 * c1
        out1 = o1 * jnp.tanh(st1)

        g2 = out1 @ p["Wx2"] + out2 @ p["Wh2"] + p["b_ih2"] + p["b_hh2"]
        i2 = jax.nn.sigmoid(g2[:, :H]); f2 = jax.nn.sigmoid(g2[:, H:2 * H])
        c2 = jnp.tanh(g2[:, 2 * H:3 * H]); o2 = jax.nn.sigmoid(g2[:, 3 * H:])
        st2 = f2 * st2 + i2 * c2
        out2 = o2 * jnp.tanh(st2)
        h_prev = out2

        logits = out2 @ p["Ww"] + p["bw"]                         # (B, V)
        logp = jax.nn.log_softmax(logits, axis=1)
        tgt = captions[:, i + 1]
        ce_mean = -jnp.mean(logp[jnp.arange(B), tgt])             # CrossEntropyLoss (mean)
        total = total + ce_mean * jnp.sum(caption_mask[:, i + 1]) / B

    return total


# --------------------------------------------------------------------------
if __name__ == "__main__":
    # small but TPU-friendly sizes
    B = 8          # batch_size
    T = 8          # n_video_lstm_steps (n_time_steps)
    F = 64         # dim_feats
    H = 128        # dim_hidden
    V = 256        # vocab_size
    N_CAP = 4      # n_caption_lstm_steps  (captions length = N_CAP + 1)

    key = jax.random.PRNGKey(0)
    ks = jax.random.split(key, 24)

    def rn(k, shape, scale):
        return (scale * jax.random.normal(k, shape)).astype(jnp.float32)

    params = {
        "H": H, "V": V, "n_cap": N_CAP,
        # encoders (nn.Linear layout: weight (out, in))
        "W_img": rn(ks[0], (H, F), 0.1), "b_img": rn(ks[1], (H,), 0.1),
        "W_mean": rn(ks[2], (H, F), 0.1), "b_mean": rn(ks[3], (H,), 0.1),
        # attention
        "w": rn(ks[4], (H, 1), 0.3), "Wa": rn(ks[5], (H, H), 0.1),
        "Ua": rn(ks[6], (H, H), 0.1), "ba": rn(ks[7], (H,), 0.1),
        # embedding + word projection
        "Wemb": rn(ks[8], (V, H), 0.3),
        "Ww": rn(ks[9], (H, V), 0.1), "bw": rn(ks[10], (V,), 0.1),
        # LSTM1 (input 2H), gate order i,f,g,o ; stored input-major (in, 4H)
        "Wx1": rn(ks[11], (2 * H, 4 * H), 0.05), "Wh1": rn(ks[12], (H, 4 * H), 0.05),
        "b_ih1": rn(ks[13], (4 * H,), 0.05), "b_hh1": rn(ks[14], (4 * H,), 0.05),
        # LSTM2 (input H)
        "Wx2": rn(ks[15], (H, 4 * H), 0.05), "Wh2": rn(ks[16], (H, 4 * H), 0.05),
        "b_ih2": rn(ks[17], (4 * H,), 0.05), "b_hh2": rn(ks[18], (4 * H,), 0.05),
    }

    action_feat = rn(ks[19], (B, T, F), 1.0)                         # (B, T, F)
    video_mask = (jax.random.uniform(ks[20], (B, T)) < 0.8).astype(jnp.float32)
    captions = jax.random.randint(ks[21], (B, N_CAP + 1), 0, V)      # (B, n_cap+1)
    caption_mask = (jax.random.uniform(ks[22], (B, N_CAP + 1)) < 0.9).astype(jnp.float32)

    loss_kernel = jax.block_until_ready(
        softcap_forward_pallas(params, B, action_feat, video_mask,
                               captions, caption_mask))
    loss_ref = jax.block_until_ready(
        softcap_forward_reference(params, B, action_feat, video_mask,
                                  captions, caption_mask))

    # bf16 matmul operands with f32 accumulation: loosened (but still tight) tolerance
    np.testing.assert_allclose(np.asarray(loss_kernel), np.asarray(loss_ref),
                               rtol=1e-2, atol=1e-2)

    # TODO(synk): evaluate / beam-search paths (argmax token feedback, python
    # beam bookkeeping) are host-side control flow and are not translated.
    print("KERNEL_OK")
</pallas_src>

<mosaic_0001>
module attributes {stable_mosaic.version = 11 : i64} {
  func.func @softcap_kernel(%arg0: memref<8x8x128xf32, #tpu.memory_space<vmem>>, %arg1: memref<128x128xbf16, #tpu.memory_space<vmem>>, %arg2: memref<1x128xf32, #tpu.memory_space<vmem>>, %arg3: memref<128x128xbf16, #tpu.memory_space<vmem>>, %arg4: memref<1x128xf32, #tpu.memory_space<vmem>>, %arg5: memref<8x8xf32, #tpu.memory_space<vmem>>, %arg6: memref<32x128xbf16, #tpu.memory_space<vmem>>, %arg7: memref<8x128xf32, #tpu.memory_space<vmem>>, %arg8: memref<128x512xbf16, #tpu.memory_space<vmem>>, %arg9: memref<256x512xbf16, #tpu.memory_space<vmem>>, %arg10: memref<1x512xf32, #tpu.memory_space<vmem>>, %arg11: memref<256x512xbf16, #tpu.memory_space<vmem>>, %arg12: memref<1x512xf32, #tpu.memory_space<vmem>>, %arg13: memref<128x256xbf16, #tpu.memory_space<vmem>>, %arg14: memref<1x256xf32, #tpu.memory_space<vmem>>, %arg15: memref<32x1xi32, #tpu.memory_space<vmem>>, %arg16: memref<32x1xf32, #tpu.memory_space<vmem>>, %arg17: memref<1x1xf32, #tpu.memory_space<vmem>>, %arg18: memref<8x8x128xf32, #tpu.memory_space<vmem>>, %arg19: memref<4x8x512xf32, #tpu.memory_space<vmem>>, %arg20: memref<4x8x128xf32, #tpu.memory_space<vmem>>) attributes {dimension_semantics = [], scalar_prefetch = 0 : i64, scratch_operands = 3 : i64, tpu.core_type = #tpu.core_type<tc>} {
    %c0 = arith.constant 0 : index
    %c0_0 = arith.constant 0 : index
    %c0_1 = arith.constant 0 : index
    %0 = vector.load %arg0[%c0, %c0_0, %c0_1] : memref<8x8x128xf32, #tpu.memory_space<vmem>>, vector<8x8x128xf32>
    %1 = vector.shape_cast %0 : vector<8x8x128xf32> to vector<64x128xf32>
    %2 = arith.truncf %1 : vector<64x128xf32> to vector<64x128xbf16>
    %c0_2 = arith.constant 0 : index
    %c0_3 = arith.constant 0 : index
    %3 = vector.load %arg1[%c0_2, %c0_3] : memref<128x128xbf16, #tpu.memory_space<vmem>>, vector<128x128xbf16>
    %cst = arith.constant dense<0.000000e+00> : vector<64x128xf32>
    %4 = tpu.matmul %2, %3, %cst {dimension_numbers = #tpu.dot_dimension_numbers<[1], [0], [0], [1], [0, 0, 1, 1], [], []>} : vector<64x128xbf16>, vector<128x128xbf16>, vector<64x128xf32> -> vector<64x128xf32>
    %5 = vector.shape_cast %4 : vector<64x128xf32> to vector<8x8x128xf32>
    %c0_4 = arith.constant 0 : index
    %c0_5 = arith.constant 0 : index
    %6 = vector.load %arg2[%c0_4, %c0_5] : memref<1x128xf32, #tpu.memory_space<vmem>>, vector<1x128xf32>
    %7 = vector.shape_cast %6 : vector<1x128xf32> to vector<1x1x128xf32>
    %8 = vector.broadcast %7 : vector<1x1x128xf32> to vector<8x8x128xf32>
    %9 = arith.addf %5, %8 : vector<8x8x128xf32>
    %c0_6 = arith.constant 0 : index
    %c0_7 = arith.constant 0 : index
    %c0_8 = arith.constant 0 : index
    %10 = vector.load %arg18[%c0_6, %c0_7, %c0_8] : memref<8x8x128xf32, #tpu.memory_space<vmem>>, vector<8x8x128xf32>
    tpu.vector_store %arg18[%c0_6, %c0_7, %c0_8], %9 {strides = array<i32>} : memref<8x8x128xf32, #tpu.memory_space<vmem>>, vector<8x8x128xf32>,
    %c0_9 = arith.constant 0 : index
    %c0_10 = arith.constant 0 : index
    %11 = vector.load %arg6[%c0_9, %c0_10] : memref<32x128xbf16, #tpu.memory_space<vmem>>, vector<32x128xbf16>
    %c0_11 = arith.constant 0 : index
    %c0_12 = arith.constant 0 : index
    %12 = vector.load %arg8[%c0_11, %c0_12] : memref<128x512xbf16, #tpu.memory_space<vmem>>, vector<128x512xbf16>
    %cst_13 = arith.constant dense<0.000000e+00> : vector<32x512xf32>
    %13 = tpu.matmul %11, %12, %cst_13 {dimension_numbers = #tpu.dot_dimension_numbers<[1], [0], [0], [1], [0, 0, 1, 1], [], []>} : vector<32x128xbf16>, vector<128x512xbf16>, vector<32x512xf32> -> vector<32x512xf32>
    %14 = vector.shape_cast %13 : vector<32x512xf32> to vector<4x8x512xf32>
    %c0_14 = arith.constant 0 : index
    %c0_15 = arith.constant 0 : index
    %c0_16 = arith.constant 0 : index
    %15 = vector.load %arg19[%c0_14, %c0_15, %c0_16] : memref<4x8x512xf32, #tpu.memory_space<vmem>>, vector<4x8x512xf32>
    tpu.vector_store %arg19[%c0_14, %c0_15, %c0_16], %14 {strides = array<i32>} : memref<4x8x512xf32, #tpu.memory_space<vmem>>, vector<4x8x512xf32>,
    %c0_17 = arith.constant 0 : index
    %c0_18 = arith.constant 0 : index
    %16 = vector.load %arg5[%c0_17, %c0_18] : memref<8x8xf32, #tpu.memory_space<vmem>>, vector<8x8xf32>
    %c0_19 = arith.constant 0 : index
    %c0_20 = arith.constant 0 : index
    %17 = vector.load %arg4[%c0_19, %c0_20] : memref<1x128xf32, #tpu.memory_space<vmem>>, vector<1x128xf32>
    %c0_21 = arith.constant 0 : index
    %c0_22 = arith.constant 0 : index
    %18 = vector.load %arg10[%c0_21, %c0_22] : memref<1x512xf32, #tpu.memory_space<vmem>>, vector<1x512xf32>
    %19 = vector.shape_cast %18 : vector<1x512xf32> to vector<1x512xf32>
    %20 = vector.broadcast %19 : vector<1x512xf32> to vector<8x512xf32>
    %c0_23 = arith.constant 0 : index
    %c0_24 = arith.constant 0 : index
    %21 = vector.load %arg12[%c0_23, %c0_24] : memref<1x512xf32, #tpu.memory_space<vmem>>, vector<1x512xf32>
    %22 = vector.shape_cast %21 : vector<1x512xf32> to vector<1x512xf32>
    %23 = vector.broadcast %22 : vector<1x512xf32> to vector<8x512xf32>
    %c0_25 = arith.constant 0 : index
    %c0_26 = arith.constant 0 : index
    %24 = vector.load %arg7[%c0_25, %c0_26] : memref<8x128xf32, #tpu.memory_space<vmem>>, vector<8x128xf32>
    %cst_27 = arith.constant 0.000000e+00 : f32
    %25 = vector.broadcast %cst_27 : f32 to vector<8x128xf32>
    %c0_i32 = arith.constant 0 : i32
    %c4_i32 = arith.constant 4 : i32
    %26 = arith.addi %c0_i32, %c4_i32 : i32
    %c1_i32 = arith.constant 1 : i32
    %27:5 = scf.for %arg21 = %c0_i32 to %26 step %c1_i32 iter_args(%arg22 = %24, %arg23 = %24, %arg24 = %25, %arg25 = %25, %arg26 = %25) -> (vector<8x128xf32>, vector<8x128xf32>, vector<8x128xf32>, vector<8x128xf32>, vector<8x128xf32>)  : i32 {
      %60 = arith.truncf %arg22 : vector<8x128xf32> to vector<8x128xbf16>
      %c0_47 = arith.constant 0 : index
      %c0_48 = arith.constant 0 : index
      %61 = vector.load %arg3[%c0_47, %c0_48] : memref<128x128xbf16, #tpu.memory_space<vmem>>, vector<128x128xbf16>
      %cst_49 = arith.constant dense<0.000000e+00> : vector<8x128xf32>
      %62 = tpu.matmul %60, %61, %cst_49 {dimension_numbers = #tpu.dot_dimension_numbers<[1], [0], [0], [1], [0, 0, 1, 1], [], []>} : vector<8x128xbf16>, vector<128x128xbf16>, vector<8x128xf32> -> vector<8x128xf32>
      %63 = vector.shape_cast %62 : vector<8x128xf32> to vector<1x8x128xf32>
      %c0_50 = arith.constant 0 : index
      %c0_51 = arith.constant 0 : index
      %c0_52 = arith.constant 0 : index
      %64 = vector.load %arg18[%c0_50, %c0_51, %c0_52] : memref<8x8x128xf32, #tpu.memory_space<vmem>>, vector<8x8x128xf32>
      %65 = vector.broadcast %63 : vector<1x8x128xf32> to vector<8x8x128xf32>
      %66 = arith.addf %65, %64 : vector<8x8x128xf32>
      %67 = math.tanh %66 : vector<8x8x128xf32>
      %68 = vector.shape_cast %17 : vector<1x128xf32> to vector<1x1x128xf32>
      %69 = vector.broadcast %68 : vector<1x1x128xf32> to vector<8x8x128xf32>
      %70 = arith.mulf %67, %69 : vector<8x8x128xf32>
      %cst_53 = arith.constant dense<0.000000e+00> : vector<8x8xf32>
      %71 = vector.multi_reduction <add>, %70, %cst_53 [2] : vector<8x8x128xf32> to vector<8x8xf32>
      %cst_54 = arith.constant dense<0xFF800000> : vector<8xf32>
      %72 = vector.multi_reduction <maximumf>, %71, %cst_54 [0] : vector<8x8xf32> to vector<8xf32>
      %73 = vector.shape_cast %72 : vector<8xf32> to vector<1x8xf32>
      %74 = vector.broadcast %73 : vector<1x8xf32> to vector<8x8xf32>
      %75 = arith.subf %71, %74 : vector<8x8xf32>
      %76 = math.exp %75 : vector<8x8xf32>
      %77 = arith.mulf %16, %76 : vector<8x8xf32>
      %cst_55 = arith.constant dense<0.000000e+00> : vector<8xf32>
      %78 = vector.multi_reduction <add>, %77, %cst_55 [0] : vector<8x8xf32> to vector<8xf32>
      %79 = vector.shape_cast %78 : vector<8xf32> to vector<1x8xf32>
      %cst_56 = arith.constant 0.000000e+00 : f32
      %80 = vector.broadcast %cst_56 : f32 to vector<1x8xf32>
      %81 = arith.cmpf oeq, %79, %80 : vector<1x8xf32>
      %82 = arith.extui %81 : vector<1x8xi1> to vector<1x8xi32>
      %83 = arith.sitofp %82 : vector<1x8xi32> to vector<1x8xf32>
      %84 = arith.addf %79, %83 : vector<1x8xf32>
      %cst_57 = arith.constant 9.99999971E-10 : f32
      %85 = vector.broadcast %cst_57 : f32 to vector<1x8xf32>
      %86 = arith.addf %84, %85 : vector<1x8xf32>
      %87 = tpu.reciprocal %86 {approx = true} : vector<1x8xf32> -> vector<1x8xf32>
      %88 = vector.broadcast %87 : vector<1x8xf32> to vector<8x8xf32>
      %89 = arith.mulf %77, %88 : vector<8x8xf32>
      %90 = vector.shape_cast %89 : vector<8x8xf32> to vector<8x8x1xf32>
      %c0_58 = arith.constant 0 : index
      %c0_59 = arith.constant 0 : index
      %c0_60 = arith.constant 0 : index
      %91 = vector.load %arg0[%c0_58, %c0_59, %c0_60] : memref<8x8x128xf32, #tpu.memory_space<vmem>>, vector<8x8x128xf32>
      %92 = vector.broadcast %90 : vector<8x8x1xf32> to vector<8x8x128xf32>
      %93 = arith.mulf %92, %91 : vector<8x8x128xf32>
      %cst_61 = arith.constant dense<0.000000e+00> : vector<8x128xf32>
      %94 = vector.multi_reduction <add>, %93, %cst_61 [0] : vector<8x8x128xf32> to vector<8x128xf32>
      %95 = tpu.concatenate %94, %arg23 in 1 : vector<8x128xf32>, vector<8x128xf32> -> vector<8x256xf32>
      %96 = arith.truncf %95 : vector<8x256xf32> to vector<8x256xbf16>
      %97 = arith.index_cast %arg21 : i32 to index
      %c0_62 = arith.constant 0 : index
      %c0_63 = arith.constant 0 : index
      %98 = vector.load %arg19[%97, %c0_62, %c0_63] : memref<4x8x512xf32, #tpu.memory_space<vmem>>, vector<1x8x512xf32>
      %99 = vector.shape_cast %98 : vector<1x8x512xf32> to vector<8x512xf32>
      %c0_64 = arith.constant 0 : index
      %c0_65 = arith.constant 0 : index
      %100 = vector.load %arg9[%c0_64, %c0_65] : memref<256x512xbf16, #tpu.memory_space<vmem>>, vector<256x512xbf16>
      %cst_66 = arith.constant dense<0.000000e+00> : vector<8x512xf32>
      %101 = tpu.matmul %96, %100, %cst_66 {dimension_numbers = #tpu.dot_dimension_numbers<[1], [0], [0], [1], [0, 0, 1, 1], [], []>} : vector<8x256xbf16>, vector<256x512xbf16>, vector<8x512xf32> -> vector<8x512xf32>
      %102 = arith.addf %99, %101 : vector<8x512xf32>
      %103 = arith.addf %102, %20 : vector<8x512xf32>
      %104 = vector.extract_strided_slice %103 {offsets = [0, 0], sizes = [8, 128], strides = [1, 1]} : vector<8x512xf32> to vector<8x128xf32>
      %105 = arith.negf %104 : vector<8x128xf32>
      %106 = math.exp %105 : vector<8x128xf32>
      %cst_67 = arith.constant 1.000000e+00 : f32
      %107 = vector.broadcast %cst_67 : f32 to vector<8x128xf32>
      %108 = arith.addf %107, %106 : vector<8x128xf32>
      %109 = arith.divf %107, %108 : vector<8x128xf32>
      %110 = vector.extract_strided_slice %103 {offsets = [0, 128], sizes = [8, 128], strides = [1, 1]} : vector<8x512xf32> to vector<8x128xf32>
      %111 = arith.negf %110 : vector<8x128xf32>
      %112 = math.exp %111 : vector<8x128xf32>
      %cst_68 = arith.constant 1.000000e+00 : f32
      %113 = vector.broadcast %cst_68 : f32 to vector<8x128xf32>
      %114 = arith.addf %113, %112 : vector<8x128xf32>
      %115 = arith.divf %113, %114 : vector<8x128xf32>
      %116 = vector.extract_strided_slice %103 {offsets = [0, 256], sizes = [8, 128], strides = [1, 1]} : vector<8x512xf32> to vector<8x128xf32>
      %117 = math.tanh %116 : vector<8x128xf32>
      %118 = vector.extract_strided_slice %103 {offsets = [0, 384], sizes = [8, 128], strides = [1, 1]} : vector<8x512xf32> to vector<8x128xf32>
      %119 = arith.negf %118 : vector<8x128xf32>
      %120 = math.exp %119 : vector<8x128xf32>
      %cst_69 = arith.constant 1.000000e+00 : f32
      %121 = vector.broadcast %cst_69 : f32 to vector<8x128xf32>
      %122 = arith.addf %121, %120 : vector<8x128xf32>
      %123 = arith.divf %121, %122 : vector<8x128xf32>
      %124 = arith.mulf %115, %arg24 : vector<8x128xf32>
      %125 = arith.mulf %109, %117 : vector<8x128xf32>
      %126 = arith.addf %124, %125 : vector<8x128xf32>
      %127 = math.tanh %126 : vector<8x128xf32>
      %128 = arith.mulf %123, %127 : vector<8x128xf32>
      %129 = tpu.concatenate %128, %arg25 in 1 : vector<8x128xf32>, vector<8x128xf32> -> vector<8x256xf32>
      %130 = arith.truncf %129 : vector<8x256xf32> to vector<8x256xbf16>
      %c0_70 = arith.constant 0 : index
      %c0_71 = arith.constant 0 : index
      %131 = vector.load %arg11[%c0_70, %c0_71] : memref<256x512xbf16, #tpu.memory_space<vmem>>, vector<256x512xbf16>
      %cst_72 = arith.constant dense<0.000000e+00> : vector<8x512xf32>
      %132 = tpu.matmul %130, %131, %cst_72 {dimension_numbers = #tpu.dot_dimension_numbers<[1], [0], [0], [1], [0, 0, 1, 1], [], []>} : vector<8x256xbf16>, vector<256x512xbf16>, vector<8x512xf32> -> vector<8x512xf32>
      %133 = arith.addf %132, %23 : vector<8x512xf32>
      %134 = vector.extract_strided_slice %133 {offsets = [0, 0], sizes = [8, 128], strides = [1, 1]} : vector<8x512xf32> to vector<8x128xf32>
      %135 = arith.negf %134 : vector<8x128xf32>
      %136 = math.exp %135 : vector<8x128xf32>
      %cst_73 = arith.constant 1.000000e+00 : f32
      %137 = vector.broadcast %cst_73 : f32 to vector<8x128xf32>
      %138 = arith.addf %137, %136 : vector<8x128xf32>
      %139 = arith.divf %137, %138 : vector<8x128xf32>
      %140 = vector.extract_strided_slice %133 {offsets = [0, 128], sizes = [8, 128], strides = [1, 1]} : vector<8x512xf32> to vector<8x128xf32>
      %141 = arith.negf %140 : vector<8x128xf32>
      %142 = math.exp %141 : vector<8x128xf32>
      %cst_74 = arith.constant 1.000000e+00 : f32
      %143 = vector.broadcast %cst_74 : f32 to vector<8x128xf32>
      %144 = arith.addf %143, %142 : vector<8x128xf32>
      %145 = arith.divf %143, %144 : vector<8x128xf32>
      %146 = vector.extract_strided_slice %133 {offsets = [0, 256], sizes = [8, 128], strides = [1, 1]} : vector<8x512xf32> to vector<8x128xf32>
      %147 = math.tanh %146 : vector<8x128xf32>
      %148 = vector.extract_strided_slice %133 {offsets = [0, 384], sizes = [8, 128], strides = [1, 1]} : vector<8x512xf32> to vector<8x128xf32>
      %149 = arith.negf %148 : vector<8x128xf32>
      %150 = math.exp %149 : vector<8x128xf32>
      %cst_75 = arith.constant 1.000000e+00 : f32
      %151 = vector.broadcast %cst_75 : f32 to vector<8x128xf32>
      %152 = arith.addf %151, %150 : vector<8x128xf32>
      %153 = arith.divf %151, %152 : vector<8x128xf32>
      %154 = arith.mulf %145, %arg26 : vector<8x128xf32>
      %155 = arith.mulf %139, %147 : vector<8x128xf32>
      %156 = arith.addf %154, %155 : vector<8x128xf32>
      %157 = math.tanh %156 : vector<8x128xf32>
      %158 = arith.mulf %153, %157 : vector<8x128xf32>
      %159 = arith.index_cast %arg21 : i32 to index
      %c0_76 = arith.constant 0 : index
      %c0_77 = arith.constant 0 : index
      %160 = vector.load %arg20[%159, %c0_76, %c0_77] : memref<4x8x128xf32, #tpu.memory_space<vmem>>, vector<1x8x128xf32>
      %161 = vector.shape_cast %160 : vector<1x8x128xf32> to vector<8x128xf32>
      %162 = vector.shape_cast %158 : vector<8x128xf32> to vector<1x8x128xf32>
      tpu.vector_store %arg20[%159, %c0_76, %c0_77], %162 {strides = array<i32>} : memref<4x8x128xf32, #tpu.memory_space<vmem>>, vector<1x8x128xf32>,
      scf.yield %158, %128, %126, %158, %156 : vector<8x128xf32>, vector<8x128xf32>, vector<8x128xf32>, vector<8x128xf32>, vector<8x128xf32>
    }
    %c4_i32_28 = arith.constant 4 : i32
    %c0_29 = arith.constant 0 : index
    %c0_30 = arith.constant 0 : index
    %c0_31 = arith.constant 0 : index
    %28 = vector.load %arg20[%c0_29, %c0_30, %c0_31] : memref<4x8x128xf32, #tpu.memory_space<vmem>>, vector<4x8x128xf32>
    %29 = vector.shape_cast %28 : vector<4x8x128xf32> to vector<32x128xf32>
    %30 = arith.truncf %29 : vector<32x128xf32> to vector<32x128xbf16>
    %c0_32 = arith.constant 0 : index
    %c0_33 = arith.constant 0 : index
    %31 = vector.load %arg13[%c0_32, %c0_33] : memref<128x256xbf16, #tpu.memory_space<vmem>>, vector<128x256xbf16>
    %cst_34 = arith.constant dense<0.000000e+00> : vector<32x256xf32>
    %32 = tpu.matmul %30, %31, %cst_34 {dimension_numbers = #tpu.dot_dimension_numbers<[1], [0], [0], [1], [0, 0, 1, 1], [], []>} : vector<32x128xbf16>, vector<128x256xbf16>, vector<32x256xf32> -> vector<32x256xf32>
    %c0_35 = arith.constant 0 : index
    %c0_36 = arith.constant 0 : index
    %33 = vector.load %arg14[%c0_35, %c0_36] : memref<1x256xf32, #tpu.memory_space<vmem>>, vector<1x256xf32>
    %34 = vector.broadcast %33 : vector<1x256xf32> to vector<32x256xf32>
    %35 = arith.addf %32, %34 : vector<32x256xf32>
    %cst_37 = arith.constant dense<0xFF800000> : vector<32xf32>
    %36 = vector.multi_reduction <maximumf>, %35, %cst_37 [1] : vector<32x256xf32> to vector<32xf32>
    %37 = vector.shape_cast %36 : vector<32xf32> to vector<32x1xf32>
    %38 = vector.broadcast %37 : vector<32x1xf32> to vector<32x256xf32>
    %39 = arith.subf %35, %38 : vector<32x256xf32>
    %40 = math.exp %39 : vector<32x256xf32>
    %cst_38 = arith.constant dense<0.000000e+00> : vector<32xf32>
    %41 = vector.multi_reduction <add>, %40, %cst_38 [1] : vector<32x256xf32> to vector<32xf32>
    %42 = vector.shape_cast %41 : vector<32xf32> to vector<32x1xf32>
    %43 = math.log %42 : vector<32x1xf32>
    %44 = arith.addf %37, %43 : vector<32x1xf32>
    %45 = tpu.iota {dimensions = array<i32: 1>} : vector<32x256xi32>
    %c0_39 = arith.constant 0 : index
    %c0_40 = arith.constant 0 : index
    %46 = vector.load %arg15[%c0_39, %c0_40] : memref<32x1xi32, #tpu.memory_space<vmem>>, vector<32x1xi32>
    %47 = vector.broadcast %46 : vector<32x1xi32> to vector<32x256xi32>
    %48 = arith.cmpi eq, %45, %47 : vector<32x256xi32>
    %49 = arith.extui %48 : vector<32x256xi1> to vector<32x256xi32>
    %50 = arith.sitofp %49 : vector<32x256xi32> to vector<32x256xf32>
    %51 = arith.mulf %50, %35 : vector<32x256xf32>
    %cst_41 = arith.constant dense<0.000000e+00> : vector<32xf32>
    %52 = vector.multi_reduction <add>, %51, %cst_41 [1] : vector<32x256xf32> to vector<32xf32>
    %53 = vector.shape_cast %52 : vector<32xf32> to vector<32x1xf32>
    %54 = arith.subf %44, %53 : vector<32x1xf32>
    %c0_42 = arith.constant 0 : index
    %c0_43 = arith.constant 0 : index
    %55 = vector.load %arg16[%c0_42, %c0_43] : memref<32x1xf32, #tpu.memory_space<vmem>>, vector<32x1xf32>
    %56 = arith.mulf %54, %55 : vector<32x1xf32>
    %cst_44 = arith.constant dense<0.000000e+00> : vector<1xf32>
    %57 = vector.multi_reduction <add>, %56, %cst_44 [0] : vector<32x1xf32> to vector<1xf32>
    %58 = vector.shape_cast %57 : vector<1xf32> to vector<1x1xf32>
    %c0_45 = arith.constant 0 : index
    %c0_46 = arith.constant 0 : index
    %59 = vector.load %arg17[%c0_45, %c0_46] : memref<1x1xf32, #tpu.memory_space<vmem>>, vector<1x1xf32>
    tpu.vector_store %arg17[%c0_45, %c0_46], %58 {strides = array<i32>} : memref<1x1xf32, #tpu.memory_space<vmem>>, vector<1x1xf32>,
    return
  }
}

</mosaic_0001>

<bundles_post_ra>
// kernel: tpu_custom_call.1
= control target key start
LH: loop header
LB: loop body
LE: loop exit
PB: predicated region body
PF: predicated region fallthrough
CT: control target
= control target key end

     0   :  { %s3947_s0 = inlined_call_operand.vmem [shape: f32[8,8,128], index: 0, kind: input, shape index: {}]   ;;  %s3948_s1 = inlined_call_operand.hbm [shape: bf16[128,128], index: 1, kind: input, shape index: {}]   ;;  %s3949_s2 = inlined_call_operand.hbm [shape: f32[1,128], index: 2, kind: input, shape index: {}]   ;;  %s3950_s3 = inlined_call_operand.hbm [shape: bf16[128,128], index: 3, kind: input, shape index: {}]   ;;  %s3951_s4 = inlined_call_operand.hbm [shape: f32[1,128], index: 4, kind: input, shape index: {}]   ;;  %s3952_s5 = inlined_call_operand.vmem [shape: f32[8,8], index: 5, kind: input, shape index: {}]   ;;  %s3953_s6 = inlined_call_operand.hbm [shape: bf16[32,128], index: 6, kind: input, shape index: {}]   ;;  %s3954_s7 = inlined_call_operand.hbm [shape: f32[8,128], index: 7, kind: input, shape index: {}]   ;;  %s3955_s8 = inlined_call_operand.hbm [shape: bf16[128,512], index: 8, kind: input, shape index: {}]   ;;  %s3956_s9 = inlined_call_operand.hbm [shape: bf16[256,512], index: 9, kind: input, shape index: {}]   ;;  %s3957_s10 = inlined_call_operand.vmem [shape: f32[1,512], index: 10, kind: input, shape index: {}]   ;;  %s3958_s11 = inlined_call_operand.hbm [shape: bf16[256,512], index: 11, kind: input, shape index: {}]   ;;  %s3959_s12 = inlined_call_operand.vmem [shape: f32[1,512], index: 12, kind: input, shape index: {}]   ;;  %s3960_s13 = inlined_call_operand.hbm [shape: bf16[128,256], index: 13, kind: input, shape index: {}]   ;;  %s3961_s14 = inlined_call_operand.vmem [shape: f32[1,256], index: 14, kind: input, shape index: {}]   ;;  %s3962_s15 = inlined_call_operand.vmem [shape: s32[32,1], index: 15, kind: input, shape index: {}]   ;;  %s3963_s16 = inlined_call_operand.vmem [shape: f32[32,1], index: 16, kind: input, shape index: {}]   ;;  %s3964_s17 = inlined_call_operand.hbm [shape: f32[1,1], index: 17, kind: output, shape index: {}]  }
   0x1   :  { %3967 = sst [smem:[#allocation30_spill]] %s3947_s0 }
   0x2   :  { %3968 = sst [smem:[#allocation31_spill]] %s3948_s1 }
   0x3   :  { %22 = vsyncpa [#allocation6], 0 }
   0x4   :  { %23 = vsyncpa [#allocation9], 0 }
   0x5   :  { %24 = vsyncpa [#allocation12], 0 }
   0x6   :  { %25 = vsyncpa [#allocation15], 0 }
   0x7   :  { %26 = vsyncpa [#allocation18], 0 }
   0x8   :  { %27 = vsyncpa [#allocation21], 0 }
   0x9   :  { %28 = vsyncpa [#allocation7], 0  ;;  %s3483_s24 = smov [#allocation8]   ;;  %s3484_s26 = smov [#allocation11]  }
   0xa   :  { %s49_s25 = sshll.u32 %s3483_s24, 4  ;;  %s71_s27 = sshll.u32 %s3484_s26, 4  ;;  %s50_s25 = int_to_ptr.vmem [resolvable:$true] %s49_s25  ;;  %s72_s27 = int_to_ptr.vmem [resolvable:$true] %s71_s27 }
   0xb   :  { %s3209_s28 = scalar_lea.vmem %s50_s25, 16  ;;  %s3213_s29 = scalar_lea.vmem %s50_s25, 32 }
   0xc   :  { %p3210_p0 = scmp.ne.s32.totalorder %s50_s25, %s3209_s28  ;;  %p3214_p1 = scmp.lt.s32.totalorder %s50_s25, %s50_s25 }
   0xd   :  { %p3215_p2 = scmp.lt.s32.totalorder %s3213_s29, %s3209_s28 }
   0xf   :  { %p3216_p3 = por %p3215_p2, %p3214_p1 }
  0x11   :  { %p3217_p4 = pnand %p3216_p3, %p3210_p0 }
  0x13   :  { %3220 = shalt.err (!%p3217_p4)
}
  0x14   :  { %52 = dma.hbm_to_vmem [thread:$0]  %s3949_s2, 16, %s50_s25, [#allocation9]  }
  0x15   :  { %s3229_s18 = scalar_lea.vmem %s72_s27, 16  ;;  %s3233_s19 = scalar_lea.vmem %s72_s27, 32 }
  0x16   :  { %p3230_p5 = scmp.ne.s32.totalorder %s72_s27, %s3229_s18  ;;  %p3234_p6 = scmp.lt.s32.totalorder %s72_s27, %s72_s27 }
  0x17   :  { %p3235_p7 = scmp.lt.s32.totalorder %s3233_s19, %s3229_s18 }
  0x19   :  { %p3236_p8 = por %p3235_p7, %p3234_p6 }
  0x1b   :  { %p3237_p9 = pnand %p3236_p8, %p3230_p5 }
  0x1d   :  { %3240 = shalt.err (!%p3237_p9)
}
  0x1e   :  { %74 = dma.hbm_to_vmem [thread:$0]  %s3951_s4, 16, %s72_s27, [#allocation12]  }
  0x1f   :  { %s3485_s21 = smov [#allocation14]  }
  0x20   :  { %s95_s22 = sshll.u32 %s3485_s21, 4  ;;  %s96_s22 = int_to_ptr.vmem [resolvable:$true] %s95_s22 }
  0x21   :  { %s3249_s23 = scalar_lea.vmem %s96_s22, 128  ;;  %p3254_p11 = scmp.lt.s32.totalorder %s96_s22, %s96_s22 }
  0x22   :  { %p3250_p10 = scmp.ne.s32.totalorder %s96_s22, %s3249_s23  ;;  %p3255_p12 = scmp.lt.s32.totalorder %s3249_s23, %s3249_s23 }
  0x24   :  { %p3256_p13 = por %p3255_p12, %p3254_p11 }
  0x26   :  { %p3257_p0 = pnand %p3256_p13, %p3250_p10 }
  0x28   :  { %3260 = shalt.err (!%p3257_p0)
}
  0x29   :  { %98 = dma.hbm_to_vmem [thread:$0]  %s3954_s7, 128, %s96_s22, [#allocation15]  }
  0x2a   :  { %s3486_s25 = smov [#allocation17]   ;;  %s3487_s28 = smov [#allocation5]  }
  0x2b   :  { %s116_s26 = sshll.u32 %s3486_s25, 4  ;;  %s36_s29 = sshll.u32 %s3487_s28, 4  ;;  %s117_s26 = int_to_ptr.vmem [resolvable:$true] %s116_s26  ;;  %s37_s29 = int_to_ptr.vmem [resolvable:$true] %s36_s29 }
  0x2c   :  { %s3269_s4 = scalar_lea.vmem %s117_s26, 8192  ;;  %p3274_p2 = scmp.lt.s32.totalorder %s117_s26, %s117_s26 }
  0x2d   :  { %p3270_p1 = scmp.ne.s32.totalorder %s117_s26, %s3269_s4  ;;  %p3275_p3 = scmp.lt.s32.totalorder %s3269_s4, %s3269_s4 }
  0x2f   :  { %p3276_p4 = por %p3275_p3, %p3274_p2 }
  0x31   :  { %p3277_p5 = pnand %p3276_p4, %p3270_p1 }
  0x33   :  { %3280 = shalt.err (!%p3277_p5)
}
  0x34   :  { %s3488_s27 = smov 256   ;;  %s3489_s0 = smov 16  }
  0x35   :  { %122 = dma.hbm_to_vmem [thread:$0]  %s3956_s9, 8192, %s117_s26, [#allocation18], %s3488_s27, %s3488_s27, %s3489_s0  }
  0x36   :  { %s3289_s7 = scalar_lea.vmem %s37_s29, 1024  ;;  %p3294_p7 = scmp.lt.s32.totalorder %s37_s29, %s37_s29 }
  0x37   :  { %p3290_p6 = scmp.ne.s32.totalorder %s37_s29, %s3289_s7  ;;  %p3295_p8 = scmp.lt.s32.totalorder %s3289_s7, %s3289_s7 }
  0x39   :  { %p3296_p9 = por %p3295_p8, %p3294_p7 }
  0x3b   :  { %p3297_p10 = pnand %p3296_p9, %p3290_p6 }
  0x3d   :  { %3300 = shalt.err (!%p3297_p10)
}
  0x3e   :  { %s3490_s19 = smov 64   ;;  %s3491_s1 = smov 4  }
  0x3f   :  { %s3969_s22 = sld [smem:[#allocation31_spill]]  ;;  %s3492_s23 = smov [#allocation10]  }
  0x40   :  { %s58_s2 = sshll.u32 %s3492_s23, 4  ;;  %s3493_s24 = smov [#allocation13]   ;;  %s59_s2 = int_to_ptr.vmem [resolvable:$true] %s58_s2 }
  0x41   :  { %s82_s25 = sshll.u32 %s3493_s24, 4  ;;  %s3309_s9 = scalar_lea.vmem %s59_s2, 1024  ;;  %s83_s25 = int_to_ptr.vmem [resolvable:$true] %s82_s25 }
  0x42   :  { %p3310_p11 = scmp.ne.s32.totalorder %s59_s2, %s3309_s9  ;;  %p3314_p12 = scmp.lt.s32.totalorder %s59_s2, %s59_s2 }
  0x43   :  { %p3315_p13 = scmp.lt.s32.totalorder %s3309_s9, %s3309_s9 }
  0x45   :  { %42 = dma.hbm_to_vmem [thread:$0]  %s3969_s22, 1024, %s37_s29, [#allocation6], %s3490_s19, %s3490_s19, %s3491_s1  }
  0x46   :  { %p3316_p0 = por %p3315_p13, %p3314_p12 }
  0x48   :  { %p3317_p1 = pnand %p3316_p0, %p3310_p11 }
  0x4a   :  { %3320 = shalt.err (!%p3317_p1)
}
  0x4b   :  { %64 = dma.hbm_to_vmem [thread:$0]  %s3950_s3, 1024, %s59_s2, [#allocation9], %s3490_s19, %s3490_s19, %s3491_s1  }
  0x4c   :  { %s3329_s4 = scalar_lea.vmem %s83_s25, 256  ;;  %p3334_p3 = scmp.lt.s32.totalorder %s83_s25, %s83_s25 }
  0x4d   :  { %p3330_p2 = scmp.ne.s32.totalorder %s83_s25, %s3329_s4  ;;  %p3335_p4 = scmp.lt.s32.totalorder %s3329_s4, %s3329_s4 }
  0x4f   :  { %p3336_p5 = por %p3335_p4, %p3334_p3 }
  0x51   :  { %p3337_p6 = pnand %p3336_p5, %p3330_p2 }
  0x53   :  { %3340 = shalt.err (!%p3337_p6)
}
  0x54   :  { %88 = dma.hbm_to_vmem [thread:$0]  %s3953_s6, 256, %s83_s25, [#allocation12], %s3490_s19, %s3490_s19, %s3491_s1  }
  0x55   :  { %s3494_s18 = smov [#allocation16]   ;;  %s3495_s20 = smov [#allocation19]  }
  0x56   :  { %s104_s7 = sshll.u32 %s3494_s18, 4  ;;  %s130_s21 = sshll.u32 %s3495_s20, 4  ;;  %s105_s7 = int_to_ptr.vmem [resolvable:$true] %s104_s7  ;;  %s131_s21 = int_to_ptr.vmem [resolvable:$true] %s130_s21 }
  0x57   :  { %s3349_s22 = scalar_lea.vmem %s105_s7, 4096  ;;  %p3354_p8 = scmp.lt.s32.totalorder %s105_s7, %s105_s7 }
  0x58   :  { %p3350_p7 = scmp.ne.s32.totalorder %s105_s7, %s3349_s22  ;;  %p3355_p9 = scmp.lt.s32.totalorder %s3349_s22, %s3349_s22 }
  0x5a   :  { %p3356_p10 = por %p3355_p9, %p3354_p8 }
  0x5c   :  { %p3357_p11 = pnand %p3356_p10, %p3350_p7 }
  0x5e   :  { %3360 = shalt.err (!%p3357_p11)
}
  0x5f   :  { %110 = dma.hbm_to_vmem [thread:$0]  %s3955_s8, 4096, %s105_s7, [#allocation15], %s3488_s27, %s3488_s27, %s3489_s0  }
  0x60   :  { %s3369_s6 = scalar_lea.vmem %s131_s21, 8192  ;;  %p3374_p13 = scmp.lt.s32.totalorder %s131_s21, %s131_s21 }
  0x61   :  { %p3370_p12 = scmp.ne.s32.totalorder %s131_s21, %s3369_s6  ;;  %p3375_p0 = scmp.lt.s32.totalorder %s3369_s6, %s3369_s6 }
  0x63   :  { %p3376_p1 = por %p3375_p0, %p3374_p13 }
  0x65   :  { %p3377_p2 = pnand %p3376_p1, %p3370_p12 }
  0x67   :  { %3380 = shalt.err (!%p3377_p2)
}
  0x68   :  { %136 = dma.hbm_to_vmem [thread:$0]  %s3958_s11, 8192, %s131_s21, [#allocation18], %s3488_s27, %s3488_s27, %s3489_s0  }
  0x69   :  { %s3496_s2 = smov [#allocation20]  }
  0x6a   :  { %s144_s24 = sshll.u32 %s3496_s2, 4  ;;  %s145_s24 = int_to_ptr.vmem [resolvable:$true] %s144_s24 }
  0x6b   :  { %s3389_s25 = scalar_lea.vmem %s145_s24, 2048  ;;  %p3394_p4 = scmp.lt.s32.totalorder %s145_s24, %s145_s24 }
  0x6c   :  { %p3390_p3 = scmp.ne.s32.totalorder %s145_s24, %s3389_s25  ;;  %p3395_p5 = scmp.lt.s32.totalorder %s3389_s25, %s3389_s25 }
  0x6e   :  { %p3396_p6 = por %p3395_p5, %p3394_p4 }
  0x70   :  { %p3397_p7 = pnand %p3396_p6, %p3390_p3 }
  0x72   :  { %3400 = shalt.err (!%p3397_p7)
}
  0x73   :  { %s3497_s8 = smov 128   ;;  %s3498_s9 = smov 8  }
  0x74   :  { %150 = dma.hbm_to_vmem [thread:$0]  %s3960_s13, 2048, %s145_s24, [#allocation21], %s3497_s8, %s3497_s8, %s3498_s9  }
  0x75   :  { %3445 = dma.done.wait [#allocation6], 1024  }
  0x76   :  { %3446 = vsyncadd [#allocation6], 4294966272 }
  0x77   :  { %3447 = dma.done.wait [#allocation9], 1040  }
  0x78   :  { %3448 = vsyncadd [#allocation9], 4294966256 }
  0x79   :  { %3449 = dma.done.wait [#allocation12], 272  }
  0x7a   :  { %3450 = vsyncadd [#allocation12], 4294967024 }
  0x7b   :  { %3451 = dma.done.wait [#allocation15], 4224  }
  0x7c   :  { %3452 = vsyncadd [#allocation15], 4294963072 }
  0x7d   :  { %3453 = dma.done.wait [#allocation18], 16384  }
  0x7e   :  { %3454 = vsyncadd [#allocation18], 4294950912 }
  0x7f   :  { %3455 = dma.done.wait [#allocation21], 2048  }
  0x80   :  { %3456 = vsyncadd [#allocation21], 4294965248  ;;  %v686_v0 = vlaneseq  ;;  %v3499_v1 = vmov 0   ;;  %v3652_v7 = vld [vmem:[%s3952_s5] sm:$0xff]  ;;  %v3674_v15 = vld [vmem:[#allocation14] sm:$0xff]   ;;  %s3970_s29 = sld [smem:[#allocation30_spill]] }
  0x81   :  { %592 = vmatprep.mubr.bf16.mxu1 %v3499_v1  ;;  %v3654_v8 = vld [vmem:[#allocation11] ss:$0 sm:$0xff]  ;;  %v2827_v20 = vld [vmem:[#allocation5 + $0x38] sm:$0xff]   ;;  %v2831_v23 = vld [vmem:[#allocation5 + $0x30] sm:$0xff]   ;;  %s3727_s8 = smov 0  }
  0x82   :  { %v3635_v2 = vshrl.u32 %v686_v0, 7  ;;  %v3659_v9 = vld [vmem:[%s3957_s10] sm:$0xf]  ;;  %v2830_v22 = vld [vmem:[#allocation16 + $0xe0] ss:$16 sps:$4 sm:$0xff]   ;;  %2682 = vmatprep.subr.bf16.mxu0 %v2827_v20  ;;  %v2847_v35 = vld [vmem:[#allocation5 + $0x10] sm:$0xff]  }
  0x83   :  { %v3672_v14 = vld [vmem:[%s3959_s12] sm:$0xf]  ;;  %2683 = vmatpush3.bf16.msra.mxu0 %v2827_v20  ;;  %v2834_v25 = vld [vmem:[#allocation16 + $0xc0] ss:$16 sps:$4 sm:$0xff]   ;;  %v2862_v49 = vld [vmem:[#allocation16 + $0xec] ss:$16 sps:$4 sm:$0xff]  }
  0x84   :  { %v3638_v3 = vsub.s32 0, %v3635_v2  ;;  %v3641_v4 = vsub.s32 1, %v3635_v2  ;;  %v3644_v5 = vsub.s32 2, %v3635_v2  ;;  %v3647_v6 = vsub.s32 3, %v3635_v2  ;;  %v2828_v21 = vld [vmem:[#allocation16 + $0xe4] ss:$16 sps:$4 sm:$0xff]   ;;  %2684 = vmatprep.subr.bf16.mxu0 %v2831_v23 }
  0x85   :  { %560 = vmatprep.subr.bf16.mxu1 %v2828_v21  ;;  %v2832_v24 = vld [vmem:[#allocation16 + $0xc4] ss:$16 sps:$4 sm:$0xff]   ;;  %v2835_v26 = vld [vmem:[#allocation5 + $0x28] sm:$0xff]   ;;  %v2843_v32 = vld [vmem:[#allocation5 + $0x18] sm:$0xff]  }
  0x86   :  { %v689_v10 = vrot.slane %v3659_v9, %v3638_v3  ;;  %v693_v11 = vrot.slane %v3659_v9, %v3641_v4  ;;  %v697_v12 = vrot.slane %v3659_v9, %v3644_v5  ;;  %v701_v13 = vrot.slane %v3659_v9, %v3647_v6  ;;  %561 = vmatpush1.bf16.msra.mxu1 %v2830_v22  ;;  %v2836_v27 = vld [vmem:[#allocation16 + $0xa4] ss:$16 sps:$4 sm:$0xff]   ;;  %v2838_v28 = vld [vmem:[#allocation16 + $0xa0] ss:$16 sps:$4 sm:$0xff]   ;;  %v3696_v50 = vld [vmem:[#allocation13] sm:$0xff]  }
  0x87   :  { %v711_v16 = vrot.slane %v3672_v14, %v3638_v3  ;;  %v715_v17 = vrot.slane %v3672_v14, %v3641_v4  ;;  %v719_v18 = vrot.slane %v3672_v14, %v3644_v5  ;;  %v723_v19 = vrot.slane %v3672_v14, %v3647_v6  ;;  %562 = vmatprep.subr.bf16.mxu1 %v2832_v24  ;;  %v2839_v29 = vld [vmem:[#allocation5 + $0x20] sm:$0xff]   ;;  %v2842_v31 = vld [vmem:[#allocation16 + $0x80] ss:$16 sps:$4 sm:$0xff]   ;;  %v190_v46 = vld [vmem:[%s3970_s29 + $0x10] sm:$0xff] }
  0x88   :  { %2685 = vmatpush3.bf16.msra.mxu0 %v2831_v23  ;;  %v2840_v30 = vld [vmem:[#allocation16 + $0x84] ss:$16 sps:$4 sm:$0xff]   ;;  %v2846_v34 = vld [vmem:[#allocation16 + $0x60] ss:$16 sps:$4 sm:$0xff]   ;;  %v2860_v54 = vld [vmem:[#allocation16 + $0xe8] ss:$16 sps:$4 sm:$0xff]  }
  0x89   :  { %2686 = vmatprep.subr.bf16.mxu0 %v2835_v26  ;;  %v2844_v33 = vld [vmem:[#allocation16 + $0x64] ss:$16 sps:$4 sm:$0xff]   ;;  %v189_v38 = vld [vmem:[%s3970_s29 + $0x8] sm:$0xff]  ;;  %v191_v47 = vld [vmem:[%s3970_s29 + $0x18] sm:$0xff] }
  0x8a   :  { %563 = vmatpush1.bf16.msra.mxu1 %v2834_v25  ;;  %v2848_v36 = vld [vmem:[#allocation16 + $0x44] ss:$16 sps:$4 sm:$0xff]   ;;  %v2850_v39 = vld [vmem:[#allocation16 + $0x40] ss:$16 sps:$4 sm:$0xff]   ;;  %v197_v51 = vpack.c.bf16 %v191_v47, %v190_v46  ;;  %v2865_v55 = vld [vmem:[#allocation16 + $0xcc] ss:$16 sps:$4 sm:$0xff]  }
  0x8b   :  { %564 = vmatprep.subr.bf16.mxu1 %v2836_v27  ;;  %v188_v37 = vld [vmem:[%s3970_s29] sm:$0xff]  ;;  %v2851_v41 = vld [vmem:[#allocation5 + $0x8] sm:$0xff]   ;;  %v194_v58 = vld [vmem:[%s3970_s29 + $0x30] sm:$0xff] }
  0x8c   :  { %2687 = vmatpush3.bf16.msra.mxu0 %v2835_v26  ;;  %v196_v40 = vpack.c.bf16 %v189_v38, %v188_v37  ;;  %v2852_v42 = vld [vmem:[#allocation16 + $0x24] ss:$16 sps:$4 sm:$0xff]   ;;  %v2854_v43 = vld [vmem:[#allocation16 + $0x20] ss:$16 sps:$4 sm:$0xff]   ;;  %v2863_v57 = vld [vmem:[#allocation16 + $0xc8] ss:$16 sps:$4 sm:$0xff]  }
  0x8d   :  { %2688 = vmatprep.subr.bf16.mxu0 %v2839_v29  ;;  %v2855_v44 = vld [vmem:[#allocation5] sm:$0xff]   ;;  %v2858_v48 = vld [vmem:[#allocation16] ss:$16 sps:$4 sm:$0xff]   ;;  %v2868_v60 = vld [vmem:[#allocation16 + $0xac] ss:$16 sps:$4 sm:$0xff]  }
  0x8e   :  { %565 = vmatpush1.bf16.msra.mxu1 %v2838_v28  ;;  %2698 = vmatprep.mubr.bf16.mxu0 %v196_v40  ;;  %v2856_v45 = vld [vmem:[#allocation16 + $0x4] ss:$16 sps:$4 sm:$0xff]   ;;  %v193_v53 = vld [vmem:[%s3970_s29 + $0x28] sm:$0xff]  ;;  %v195_v59 = vld [vmem:[%s3970_s29 + $0x38] sm:$0xff] }
  0x8f   :  { %566 = vmatprep.subr.bf16.mxu1 %v2840_v30  ;;  %v192_v52 = vld [vmem:[%s3970_s29 + $0x20] sm:$0xff]  ;;  %v199_v61 = vpack.c.bf16 %v195_v59, %v194_v58  ;;  %v2875_v63 = vld [vmem:[#allocation13 + $0x8] sm:$0xff]   ;;  %v2871_v20 = vld [vmem:[#allocation16 + $0x8c] ss:$16 sps:$4 sm:$0xff]  }
  0x90   :  { %2689 = vmatpush3.bf16.msra.mxu0 %v2839_v29  ;;  %v198_v56 = vpack.c.bf16 %v193_v53, %v192_v52  ;;  %v2866_v62 = vld [vmem:[#allocation16 + $0xa8] ss:$16 sps:$4 sm:$0xff]   ;;  %v2874_v22 = vld [vmem:[#allocation16 + $0x6c] ss:$16 sps:$4 sm:$0xff]   ;;  %v2454_v30 = vld [vmem:[#allocation8] ss:$0 sm:$0xff] }
  0x91   :  { %2690 = vmatprep.subr.bf16.mxu0 %v2843_v32  ;;  %v2869_v21 = vld [vmem:[#allocation16 + $0x88] ss:$16 sps:$4 sm:$0xff]   ;;  %v2878_v24 = vld [vmem:[#allocation16 + $0x4c] ss:$16 sps:$4 sm:$0xff]  }
  0x92   :  { %567 = vmatpush1.bf16.msra.mxu1 %v2842_v31  ;;  %v2872_v23 = vld [vmem:[#allocation16 + $0x68] ss:$16 sps:$4 sm:$0xff]   ;;  %v2881_v26 = vld [vmem:[#allocation16 + $0x2c] ss:$16 sps:$4 sm:$0xff]  }
  0x93   :  { %568 = vmatprep.subr.bf16.mxu1 %v2844_v33  ;;  %v2876_v25 = vld [vmem:[#allocation16 + $0x48] ss:$16 sps:$4 sm:$0xff]   ;;  %v2884_v28 = vld [vmem:[#allocation16 + $0xc] ss:$16 sps:$4 sm:$0xff]  }
  0x94   :  { %2691 = vmatpush3.bf16.msra.mxu0 %v2843_v32  ;;  %v2879_v27 = vld [vmem:[#allocation16 + $0x28] ss:$16 sps:$4 sm:$0xff]  }
  0x95   :  { %2692 = vmatprep.subr.bf16.mxu0 %v2847_v35  ;;  %v2882_v29 = vld [vmem:[#allocation16 + $0x8] ss:$16 sps:$4 sm:$0xff]  }
  0x96   :  { %569 = vmatpush1.bf16.msra.mxu1 %v2846_v34 }
  0x97   :  { %570 = vmatprep.subr.bf16.mxu1 %v2848_v36 }
  0x98   :  { %2693 = vmatpush3.bf16.msra.mxu0 %v2847_v35 }
  0x99   :  { %2694 = vmatprep.subr.bf16.mxu0 %v2851_v41 }
  0x9a   :  { %571 = vmatpush1.bf16.msra.mxu1 %v2850_v39 }
  0x9b   :  { %572 = vmatprep.subr.bf16.mxu1 %v2852_v42 }
  0x9c   :  { %2695 = vmatpush3.bf16.msra.mxu0 %v2851_v41 }
  0x9d   :  { %2696 = vmatprep.subr.bf16.mxu0 %v2855_v44 }
  0x9e   :  { %573 = vmatpush1.bf16.msra.mxu1 %v2854_v43 }
  0x9f   :  { %574 = vmatprep.subr.bf16.mxu1 %v2856_v45 }
  0xa0   :  { %2697 = vmatpush3.bf16.msra.mxu0 %v2855_v44 }
  0xa1   :  { %613 = vmatprep.subr.bf16.mxu0 %v2862_v49 }
  0xa2   :  { %575 = vmatpush1.bf16.msra.mxu1 %v2858_v48 }
  0xa3   :  { %2726 = vmatprep.subr.bf16.mxu1 %v2862_v49  ;;  %2699 = vmatmul.mubr.bf16.vlgmr.msra.gmra.mxu0 %v197_v51 }
  0xa4   :  { %614 = vmatpush1.bf16.msra.mxu0 %v2860_v54  ;;  %2702 = vmatprep.mubr.bf16.mxu0 %v198_v56 }
  0xa5   :  { %593 = vmatmul.mubr.bf16.vlgmr.msra.gmra.mxu1 %v3696_v50  ;;  %615 = vmatprep.subr.bf16.mxu0 %v2865_v55 }
  0xa6   :  { %2734 = vmatpush1.bf16.msra.mxu1 %v2860_v54  ;;  %602 = vmatprep.mubr.bf16.mxu1 %v3499_v1 }
  0xa7   :  { %2727 = vmatprep.subr.bf16.mxu1 %v2865_v55 }
  0xa8   :  { %616 = vmatpush1.bf16.msra.mxu0 %v2863_v57 }
  0xa9   :  { %617 = vmatprep.subr.bf16.mxu0 %v2868_v60 }
  0xaa   :  { %2735 = vmatpush1.bf16.msra.mxu1 %v2863_v57 }
  0xab   :  { %2728 = vmatprep.subr.bf16.mxu1 %v2868_v60  ;;  %2703 = vmatmul.mubr.bf16.gmra.mxu0 %v199_v61 }
  0xac   :  { %618 = vmatpush1.bf16.msra.mxu0 %v2866_v62  ;;  %645 = vmatprep.mubr.bf16.mxu0 %v3499_v1 }
  0xad   :  { %603 = vmatmul.mubr.bf16.gmra.mxu1 %v2875_v63  ;;  %619 = vmatprep.subr.bf16.mxu0 %v2871_v20 }
  0xae   :  { %2736 = vmatpush1.bf16.msra.mxu1 %v2866_v62  ;;  %655 = vmatprep.mubr.bf16.mxu1 %v3499_v1 }
  0xaf   :  { %2729 = vmatprep.subr.bf16.mxu1 %v2871_v20  ;;  %v3717_v20 = vmov 0.0  }
  0xb0   :  { %620 = vmatpush1.bf16.msra.mxu0 %v2869_v21 }
  0xb1   :  { %621 = vmatprep.subr.bf16.mxu0 %v2874_v22 }
  0xb2   :  { %2737 = vmatpush1.bf16.msra.mxu1 %v2869_v21  ;;  %v3719_v21 = vmov 0.0  }
  0xb3   :  { %2730 = vmatprep.subr.bf16.mxu1 %v2874_v22  ;;  %v3971_v22 = vmov %v3674_v15 }
  0xb4   :  { %622 = vmatpush1.bf16.msra.mxu0 %v2872_v23 }
  0xb5   :  { %623 = vmatprep.subr.bf16.mxu0 %v2878_v24 }
  0xb6   :  { %2738 = vmatpush1.bf16.msra.mxu1 %v2872_v23 }
  0xb7   :  { %2731 = vmatprep.subr.bf16.mxu1 %v2878_v24 }
  0xb8   :  { %624 = vmatpush1.bf16.msra.mxu0 %v2876_v25 }
  0xb9   :  { %625 = vmatprep.subr.bf16.mxu0 %v2881_v26 }
  0xba   :  { %2739 = vmatpush1.bf16.msra.mxu1 %v2876_v25 }
  0xbb   :  { %2732 = vmatprep.subr.bf16.mxu1 %v2881_v26 }
  0xbc   :  { %626 = vmatpush1.bf16.msra.mxu0 %v2879_v27 }
  0xbd   :  { %627 = vmatprep.subr.bf16.mxu0 %v2884_v28 }
  0xbe   :  { %2740 = vmatpush1.bf16.msra.mxu1 %v2879_v27 }
  0xbf   :  { %2733 = vmatprep.subr.bf16.mxu1 %v2884_v28 }
  0xc0   :  { %628 = vmatpush1.bf16.msra.mxu0 %v2882_v29 }
  0xc2   :  { %2741 = vmatpush1.bf16.msra.mxu1 %v2882_v29 }
  0xc3   :  { %646 = vmatmul.mubr.bf16.vlgmr.msra.gmra.mxu0 %v3696_v50 }
  0xc5   :  { %656 = vmatmul.mubr.bf16.vlgmr.msra.gmra.mxu1 %v2875_v63  ;;  %v3715_v63 = vmov 0.0  }
 0x163   :  { %v2700_v31 = vpop.f32.mrf.mxu0 }
 0x164   :  { %v338_v32 = vadd.f32 %v2700_v31, %v2454_v30 }
 0x165   :  { %v594_v33 = vpop.f32.mrf.mxu1  ;;  %v298_v34 = vpop.f32.mrf.mxu0 }
 0x166   :  { %666 = vst [vmem:[#allocation3] sm:$0xff] %v594_v33  ;;  %346 = vst [vmem:[#allocation2 + $0x18] sm:$0xff] %v338_v32  ;;  %v336_v35 = vadd.f32 %v2454_v30, %v298_v34 }
 0x167   :  { %v596_v36 = vpop.f32.mrf.mxu1  ;;  %v2701_v37 = vpop.f32.mrf.mxu0 }
 0x168   :  { %667 = vst [vmem:[#allocation3 + $0x8] sm:$0xff] %v596_v36  ;;  %344 = vst [vmem:[#allocation2 + $0x30] sm:$0xff] %v336_v35  ;;  %v339_v38 = vadd.f32 %v2701_v37, %v2454_v30 }
 0x169   :  { %v598_v39 = vpop.f32.mrf.mxu1  ;;  %v301_v40 = vpop.f32.mrf.mxu0 }
 0x16a   :  { %670 = vst [vmem:[#allocation3 + $0x20] sm:$0xff] %v598_v39  ;;  %347 = vst [vmem:[#allocation2 + $0x10] sm:$0xff] %v339_v38  ;;  %v337_v41 = vadd.f32 %v2454_v30, %v301_v40 }
 0x16b   :  { %v600_v42 = vpop.f32.mrf.mxu1  ;;  %v2704_v43 = vpop.f32.mrf.mxu0 }
 0x16c   :  { %671 = vst [vmem:[#allocation3 + $0x28] sm:$0xff] %v600_v42  ;;  %345 = vst [vmem:[#allocation2] sm:$0xff] %v337_v41  ;;  %v342_v44 = vadd.f32 %v2704_v43, %v2454_v30 }
 0x16d   :  { %v604_v45 = vpop.f32.mrf.mxu1  ;;  %v314_v46 = vpop.f32.mrf.mxu0 }
 0x16e   :  { %674 = vst [vmem:[#allocation3 + $0x40] sm:$0xff] %v604_v45  ;;  %350 = vst [vmem:[#allocation2 + $0x28] sm:$0xff] %v342_v44  ;;  %v340_v47 = vadd.f32 %v2454_v30, %v314_v46 }
 0x16f   :  { %v606_v48 = vpop.f32.mrf.mxu1  ;;  %v2705_v49 = vpop.f32.mrf.mxu0 }
 0x170   :  { %675 = vst [vmem:[#allocation3 + $0x48] sm:$0xff] %v606_v48  ;;  %348 = vst [vmem:[#allocation2 + $0x8] sm:$0xff] %v340_v47  ;;  %v343_v50 = vadd.f32 %v2705_v49, %v2454_v30 }
 0x171   :  { %v608_v51 = vpop.f32.mrf.mxu1  ;;  %v317_v52 = vpop.f32.mrf.mxu0 }
 0x172   :  { %678 = vst [vmem:[#allocation3 + $0x60] sm:$0xff] %v608_v51  ;;  %351 = vst [vmem:[#allocation2 + $0x38] sm:$0xff] %v343_v50  ;;  %v341_v53 = vadd.f32 %v2454_v30, %v317_v52 }
 0x173   :  { %v610_v54 = vpop.f32.mrf.mxu1 }
 0x174   :  { %679 = vst [vmem:[#allocation3 + $0x68] sm:$0xff] %v610_v54  ;;  %349 = vst [vmem:[#allocation2 + $0x20] sm:$0xff] %v341_v53 }
 0x183   :  { %v647_v55 = vpop.f32.mrf.mxu0 }
 0x184   :  { %668 = vst [vmem:[#allocation3 + $0x10] sm:$0xff] %v647_v55 }
 0x185   :  { %v657_v56 = vpop.f32.mrf.mxu1  ;;  %v649_v57 = vpop.f32.mrf.mxu0 }
 0x186   :  { %676 = vst [vmem:[#allocation3 + $0x50] sm:$0xff] %v657_v56  ;;  %669 = vst [vmem:[#allocation3 + $0x18] sm:$0xff] %v649_v57 }
 0x187   :  { %v659_v58 = vpop.f32.mrf.mxu1  ;;  %v651_v59 = vpop.f32.mrf.mxu0 }
 0x188   :  { %677 = vst [vmem:[#allocation3 + $0x58] sm:$0xff] %v659_v58  ;;  %672 = vst [vmem:[#allocation3 + $0x30] sm:$0xff] %v651_v59 }
 0x189   :  { %v661_v60 = vpop.f32.mrf.mxu1  ;;  %v653_v61 = vpop.f32.mrf.mxu0 }
 0x18a   :  { %680 = vst [vmem:[#allocation3 + $0x70] sm:$0xff] %v661_v60  ;;  %673 = vst [vmem:[#allocation3 + $0x38] sm:$0xff] %v653_v61 }
 0x18b   :  { %v663_v62 = vpop.f32.mrf.mxu1 }
 0x18c   :  { %681 = vst [vmem:[#allocation3 + $0x78] sm:$0xff] %v663_v62 }
 0x18d LB: > { %v2885_v23 = vld [vmem:[#allocation10 + $0x38] sm:$0xff]   ;;  %v3500_v24 = vmov 0.0   ;;  %v2886_v25 = vld [vmem:[#allocation10 + $0x30] sm:$0xff]   ;;  %vm3501_vm0 = vmmov 0   ;;  %v2887_v26 = vld [vmem:[#allocation10 + $0x28] sm:$0xff]   ;;  %v740_v32 = vpack.c.bf16 %v3477_v15, %v3477_v15  ;;  %vm972_vm1 = vcmask 1041409   ;;  %s3481_s8 = sphi %s3727_s8, %s734_s8   ;;  %v3477_v15 = vphi %v3674_v15, %v3974_v15   ;;  %v3473_v22 = vphi %v3971_v22, %v1588_v22   ;;  %v3469_v21 = vphi %v3719_v21, %v1586_v21   ;;  %v3465_v20 = vphi %v3717_v20, %v3973_v20   ;;  %v3461_v63 = vphi %v3715_v63, %v2078_v63  }
 0x18e   : > { %2706 = vmatprep.subr.bf16.mxu0 %v3500_v24  ;;  %2722 = vmatprep.mubr.msk.bf16.mxu0 %vm3501_vm0, %v3500_v24  ;;  %v2888_v27 = vld [vmem:[#allocation10 + $0x20] sm:$0xff]   ;;  %v2889_v28 = vld [vmem:[#allocation10 + $0x18] sm:$0xff]   ;;  %v2890_v29 = vld [vmem:[#allocation10 + $0x10] sm:$0xff]   ;;  %vm974_vm2 = vcmask 1042434   ;;  %vm976_vm3 = vcmask 1043459   ;;  %vm978_vm4 = vcmask 1044484  }
 0x18f   : > { %2707 = vmatpush3.bf16.msra.mxu0 %v2885_v23  ;;  %v2891_v30 = vld [vmem:[#allocation10 + $0x8] sm:$0xff]   ;;  %v2892_v31 = vld [vmem:[#allocation10] sm:$0xff]   ;;  %v847_v33 = vld [vmem:[#allocation2 + $0x18] sm:$0xff]  ;;  %vm980_vm5 = vcmask 1045509   ;;  %vm982_vm6 = vcmask 1046534   ;;  %vm984_vm7 = vcmask 1047559  }
 0x190   : > { %2708 = vmatprep.subr.bf16.mxu0 %v3500_v24  ;;  %v845_v34 = vld [vmem:[#allocation2 + $0x30] sm:$0xff]  ;;  %v846_v36 = vld [vmem:[#allocation2] sm:$0xff]  ;;  %v849_v44 = vld [vmem:[#allocation2 + $0x8] sm:$0xff]  ;;  %vm988_vm8 = vcmask 64512   ;;  %s3972_s28 = sld [smem:[#allocation30_spill]]  ;;  %s2660_s22 = sshll.u32 %s3481_s8, 5 }
 0x191   : > { %v848_v35 = vld [vmem:[#allocation2 + $0x10] sm:$0xff]  ;;  %v850_v43 = vld [vmem:[#allocation2 + $0x20] sm:$0xff]  ;;  %v852_v48 = vld [vmem:[#allocation2 + $0x38] sm:$0xff]  ;;  %s1086_s3 = scalar_lea.vmem [#allocation3], %s2660_s22  ;;  %s2635_s23 = sshll.u32 %s3481_s8, 3 }
 0x192   : > { %v851_v49 = vld [vmem:[#allocation2 + $0x28] sm:$0xff]  ;;  %s2082_s6 = scalar_lea.vmem [#allocation4], %s2635_s23  ;;  %s734_s8 = sadd.s32 1, %s3481_s8  }
 0x193   : > { %2709 = vmatpush3.bf16.msra.mxu0 %v2886_v25  ;;  %p731_p8 = scmp.ge.s32.totalorder %s734_s8, 4  }
 0x194   : > { %2710 = vmatprep.subr.bf16.mxu0 %v3500_v24  ;;  %3152 = vset.pattern.permute.xlu1 (%p731_p8), %v3499_v1  ;;  %v3171_v9 = vld [vmem:[#allocation20 + $0x14] ss:$8 sps:$4 sm:$0xff] (%p731_p8)   ;;  %s3503_s12 = smov (%p731_p8), [#allocation22]  }
 0x195   :  { %3151 = vset.pattern.permute.xlu0 (%p731_p8), %v3499_v1  ;;  %s2408_s29 = sshll.u32 (%p731_p8), %s3503_s12, 4  ;;  %s2409_s29 = int_to_ptr.vmem [resolvable:$true] %s2408_s29 }
 0x196   :  { %s3401_s30 = scalar_lea.vmem (%p731_p8), %s2409_s29, 16  ;;  %p3406_p10 = scmp.lt.s32.totalorder (%p731_p8), %s2409_s29, %s2409_s29 }
 0x197   : > { %2711 = vmatpush3.bf16.msra.mxu0 %v2887_v26  ;;  %p3402_p9 = scmp.ne.s32.totalorder (%p731_p8), %s2409_s29, %s3401_s30 }
 0x198   : > { %2712 = vmatprep.subr.bf16.mxu0 %v3500_v24 }
 0x19b   : > { %2713 = vmatpush3.bf16.msra.mxu0 %v2888_v27 }
 0x19c   : > { %2714 = vmatprep.subr.bf16.mxu0 %v3500_v24 }
 0x19f   : > { %2715 = vmatpush3.bf16.msra.mxu0 %v2889_v28 }
 0x1a0   : > { %2716 = vmatprep.subr.bf16.mxu0 %v3500_v24 }
 0x1a3   : > { %2717 = vmatpush3.bf16.msra.mxu0 %v2890_v29  ;;  %v2893_v29 = vld [vmem:[#allocation17 + $0xe4] ss:$16 sps:$4 sm:$0xff]  }
 0x1a4   : > { %2718 = vmatprep.subr.bf16.mxu0 %v3500_v24  ;;  %1475 = vmatprep.subr.bf16.mxu1 %v2893_v29  ;;  %v2947_v29 = vld [vmem:[#allocation17 + $0x1c4] ss:$16 sps:$4 sm:$0xff]  }
 0x1a7   : > { %2719 = vmatpush3.bf16.msra.mxu0 %v2891_v30  ;;  %v2895_v30 = vld [vmem:[#allocation17 + $0xe8] ss:$16 sps:$4 sm:$0xff]  }
 0x1a8   : > { %2720 = vmatprep.subr.bf16.mxu0 %v3500_v24 }
 0x1ab   : > { %2721 = vmatpush3.bf16.msra.mxu0 %v2892_v31  ;;  %v2897_v31 = vld [vmem:[#allocation17 + $0xec] ss:$16 sps:$4 sm:$0xff]  }
 0x1ac   : > { %1516 = vmatprep.subr.bf16.mxu0 %v2897_v31 }
 0x1ae   : > { %2723 = vmatmul.mubr.bf16.vlgmr.msra.gmra.mxu0 %v740_v32  ;;  %v2898_v32 = vld [vmem:[#allocation17 + $0xe0] ss:$16 sps:$4 sm:$0xff]  }
 0x1af   : > { %1476 = vmatpush1.bf16.msra.mxu1 %v2898_v32  ;;  %1517 = vmatpush1.bf16.msra.mxu0 %v2895_v30  ;;  %v2951_v30 = vld [vmem:[#allocation17 + $0x1cc] ss:$16 sps:$4 sm:$0xff]  }
 0x26e   : > { %v839_v37 = vpop.f32.mrf.mxu0 }
 0x26f   : > { %v855_v38 = vadd.f32 %v847_v33, %v839_v37  ;;  %v853_v39 = vadd.f32 %v845_v34, %v839_v37  ;;  %v856_v40 = vadd.f32 %v848_v35, %v839_v37  ;;  %v854_v42 = vadd.f32 %v846_v36, %v839_v37  ;;  %v2899_v33 = vld [vmem:[#allocation17 + $0xc4] ss:$16 sps:$4 sm:$0xff]   ;;  %v2903_v34 = vld [vmem:[#allocation17 + $0xcc] ss:$16 sps:$4 sm:$0xff]   ;;  %v2901_v35 = vld [vmem:[#allocation17 + $0xc8] ss:$16 sps:$4 sm:$0xff]  }
 0x270   : > { %v2724_v41 = vpop.f32.mrf.mxu0  ;;  %v858_v46 = vadd.f32 %v850_v43, %v839_v37  ;;  %v857_v47 = vadd.f32 %v849_v44, %v839_v37  ;;  %v860_v50 = vadd.f32 %v852_v48, %v839_v37  ;;  %v859_v51 = vadd.f32 %v851_v49, %v839_v37  ;;  %v2904_v36 = vld [vmem:[#allocation17 + $0xc0] ss:$16 sps:$4 sm:$0xff]   ;;  %1477 = vmatprep.subr.bf16.mxu1 %v2899_v33  ;;  %v2905_v37 = vld [vmem:[#allocation17 + $0xa4] ss:$16 sps:$4 sm:$0xff]   ;;  %v2913_v43 = vld [vmem:[#allocation17 + $0x88] ss:$16 sps:$4 sm:$0xff]  }
 0x271   : > { %3085 = vtanh.f32 %v855_v38  ;;  %1518 = vmatprep.subr.bf16.mxu0 %v2903_v34  ;;  %v2909_v38 = vld [vmem:[#allocation17 + $0xac] ss:$16 sps:$4 sm:$0xff]   ;;  %1478 = vmatpush1.bf16.msra.mxu1 %v2904_v36  ;;  %v2911_v41 = vld [vmem:[#allocation17 + $0x84] ss:$16 sps:$4 sm:$0xff]   ;;  %v2916_v44 = vld [vmem:[#allocation17 + $0x80] ss:$16 sps:$4 sm:$0xff]  }
 0x272   : > { %v842_v45 = vpop.f32.mrf.mxu0  ;;  %3087 = vtanh.f32 %v853_v39  ;;  %1519 = vmatpush1.bf16.msra.mxu0 %v2901_v35  ;;  %v2907_v39 = vld [vmem:[#allocation17 + $0xa8] ss:$16 sps:$4 sm:$0xff]   ;;  %1479 = vmatprep.subr.bf16.mxu1 %v2905_v37  ;;  %v2923_v48 = vld [vmem:[#allocation17 + $0x44] ss:$16 sps:$4 sm:$0xff]   ;;  %v2927_v49 = vld [vmem:[#allocation17 + $0x4c] ss:$16 sps:$4 sm:$0xff]  }
 0x273   : > { %3089 = vtanh.f32 %v856_v40  ;;  %v2910_v40 = vld [vmem:[#allocation17 + $0xa0] ss:$16 sps:$4 sm:$0xff]   ;;  %1520 = vmatprep.subr.bf16.mxu0 %v2909_v38  ;;  %v2917_v45 = vld [vmem:[#allocation17 + $0x64] ss:$16 sps:$4 sm:$0xff]   ;;  %v2949_v33 = vld [vmem:[#allocation17 + $0x1c8] ss:$16 sps:$4 sm:$0xff]  }
 0x274   : > { %v2725_v15 = vpop.f32.mrf.mxu0  ;;  %3091 = vtanh.f32 %v854_v42  ;;  %v2915_v42 = vld [vmem:[#allocation17 + $0x8c] ss:$16 sps:$4 sm:$0xff]   ;;  %v2952_v34 = vld [vmem:[#allocation17 + $0x1c0] ss:$16 sps:$4 sm:$0xff]   ;;  %v2953_v35 = vld [vmem:[#allocation17 + $0x1a4] ss:$16 sps:$4 sm:$0xff]  }
 0x275   : > { %3093 = vtanh.f32 %v858_v46  ;;  %1480 = vmatpush1.bf16.msra.mxu1 %v2910_v40  ;;  %v2921_v46 = vld [vmem:[#allocation17 + $0x6c] ss:$16 sps:$4 sm:$0xff]   ;;  %v2919_v15 = vld [vmem:[#allocation17 + $0x68] ss:$16 sps:$4 sm:$0xff]  }
 0x276   : > { %3095 = vtanh.f32 %v857_v47  ;;  %1521 = vmatpush1.bf16.msra.mxu0 %v2907_v39  ;;  %1481 = vmatprep.subr.bf16.mxu1 %v2911_v41  ;;  %v2922_v47 = vld [vmem:[#allocation17 + $0x60] ss:$16 sps:$4 sm:$0xff]   ;;  %v2957_v36 = vld [vmem:[#allocation17 + $0x1ac] ss:$16 sps:$4 sm:$0xff]  }
 0x277   : > { %3097 = vtanh.f32 %v860_v50  ;;  %1522 = vmatprep.subr.bf16.mxu0 %v2915_v42  ;;  %v2925_v50 = vld [vmem:[#allocation17 + $0x48] ss:$16 sps:$4 sm:$0xff]  }
 0x278   : > { %3099 = vtanh.f32 %v859_v51  ;;  %v2928_v51 = vld [vmem:[#allocation17 + $0x40] ss:$16 sps:$4 sm:$0xff]  }
 0x279   : > { %1482 = vmatpush1.bf16.msra.mxu1 %v2916_v44  ;;  %v2958_v44 = vld [vmem:[#allocation17 + $0x1a0] ss:$16 sps:$4 sm:$0xff]  }
 0x27a   : > { %1523 = vmatpush1.bf16.msra.mxu0 %v2913_v43  ;;  %1483 = vmatprep.subr.bf16.mxu1 %v2917_v45  ;;  %v2955_v43 = vld [vmem:[#allocation17 + $0x1a8] ss:$16 sps:$4 sm:$0xff]  }
 0x27b   : > { %1524 = vmatprep.subr.bf16.mxu0 %v2921_v46 }
 0x27d   : > { %1484 = vmatpush1.bf16.msra.mxu1 %v2922_v47 }
 0x27e   : > { %v3086_v52 = vpop.eup %3085  ;;  %1525 = vmatpush1.bf16.msra.mxu0 %v2919_v15  ;;  %1485 = vmatprep.subr.bf16.mxu1 %v2923_v48 }
 0x27f   : > { %v3088_v53 = vpop.eup %3087  ;;  %v877_v54 = vmul.f32 %v3086_v52, %v3654_v8  ;;  %1526 = vmatprep.subr.bf16.mxu0 %v2927_v49  ;;  %v2929_v52 = vld [vmem:[#allocation17 + $0x24] ss:$16 sps:$4 sm:$0xff]  }
 0x280   : > { %v3090_v55 = vpop.eup %3089  ;;  %v875_v56 = vmul.f32 %v3088_v53, %v3654_v8  ;;  %v2933_v53 = vld [vmem:[#allocation17 + $0x2c] ss:$16 sps:$4 sm:$0xff]  }
 0x281   : > { %v3092_v57 = vpop.eup %3091  ;;  %887 = vadd.xlane.f32.xlu1 %v877_v54  ;;  %v878_v58 = vmul.f32 %v3090_v55, %v3654_v8  ;;  %1486 = vmatpush1.bf16.msra.mxu1 %v2928_v51  ;;  %v2931_v54 = vld [vmem:[#allocation17 + $0x28] ss:$16 sps:$4 sm:$0xff]   ;;  %v2934_v55 = vld [vmem:[#allocation17 + $0x20] ss:$16 sps:$4 sm:$0xff]  }
 0x282   : > { %883 = vadd.xlane.f32.xlu0 %v875_v56  ;;  %v3094_v59 = vpop.eup %3093  ;;  %v876_v60 = vmul.f32 %v3092_v57, %v3654_v8  ;;  %1527 = vmatpush1.bf16.msra.mxu0 %v2925_v50  ;;  %v2935_v56 = vld [vmem:[#allocation17 + $0x4] ss:$16 sps:$4 sm:$0xff]   ;;  %v2939_v57 = vld [vmem:[#allocation17 + $0xc] ss:$16 sps:$4 sm:$0xff]  }
 0x283   : > { %v3096_v61 = vpop.eup %3095  ;;  %v880_v62 = vmul.f32 %v3094_v59, %v3654_v8  ;;  %1487 = vmatprep.subr.bf16.mxu1 %v2929_v52  ;;  %1528 = vmatprep.subr.bf16.mxu0 %v2933_v53 }
 0x284   : > { %v3098_v23 = vpop.eup %3097  ;;  %v879_v25 = vmul.f32 %v3096_v61, %v3654_v8  ;;  %v2940_v61 = vld [vmem:[#allocation17] ss:$16 sps:$4 sm:$0xff]  }
 0x285   : > { %889 = vadd.xlane.f32.xlu1 %v878_v58  ;;  %v3100_v26 = vpop.eup %3099  ;;  %v882_v27 = vmul.f32 %v3098_v23, %v3654_v8  ;;  %1488 = vmatpush1.bf16.msra.mxu1 %v2934_v55  ;;  %v2945_v23 = vld [vmem:[#allocation17 + $0x1ec] ss:$16 sps:$4 sm:$0xff]  }
 0x286   : > { %885 = vadd.xlane.f32.xlu0 %v876_v60  ;;  %v881_v28 = vmul.f32 %v3100_v26, %v3654_v8  ;;  %1529 = vmatpush1.bf16.msra.mxu0 %v2931_v54  ;;  %v2937_v60 = vld [vmem:[#allocation17 + $0x8] ss:$16 sps:$4 sm:$0xff]  }
 0x287   : > { %1489 = vmatprep.subr.bf16.mxu1 %v2935_v56  ;;  %1530 = vmatprep.subr.bf16.mxu0 %v2939_v57  ;;  %v3170_v8 = vld [vmem:[#allocation20 + $0x20] ss:$8 sps:$4 sm:$0xff] (%p731_p8)  }
 0x289   : > { %893 = vadd.xlane.f32.xlu1 %v880_v62  ;;  %v2941_v62 = vld [vmem:[#allocation17 + $0x1e4] ss:$16 sps:$4 sm:$0xff]   ;;  %1490 = vmatpush1.bf16.msra.mxu1 %v2940_v61 }
 0x28a   : > { %891 = vadd.xlane.f32.xlu0 %v879_v25  ;;  %1531 = vmatpush1.bf16.msra.mxu0 %v2937_v60 }
 0x28b   : > { %1491 = vmatprep.subr.bf16.mxu1 %v2941_v62  ;;  %1532 = vmatprep.subr.bf16.mxu0 %v2945_v23 }
 0x28d   : > { %897 = vadd.xlane.f32.xlu1 %v882_v27  ;;  %v2943_v27 = vld [vmem:[#allocation17 + $0x1e8] ss:$16 sps:$4 sm:$0xff]  }
 0x28e   : > { %895 = vadd.xlane.f32.xlu0 %v881_v28  ;;  %v2946_v28 = vld [vmem:[#allocation17 + $0x1e0] ss:$16 sps:$4 sm:$0xff]   ;;  %1533 = vmatpush2.bf16.msra.mxu0 %v2943_v27 }
 0x28f   : > { %1492 = vmatpush2.bf16.msra.mxu1 %v2946_v28  ;;  %1534 = vmatprep.subr.bf16.mxu0 %v2951_v30 }
 0x290   : > { %1493 = vmatprep.subr.bf16.mxu1 %v2947_v29 }
 0x292   : > { %1535 = vmatpush2.bf16.msra.mxu0 %v2949_v33 }
 0x293   : > { %1494 = vmatpush2.bf16.msra.mxu1 %v2952_v34  ;;  %1536 = vmatprep.subr.bf16.mxu0 %v2957_v36 }
 0x294   : > { %1495 = vmatprep.subr.bf16.mxu1 %v2953_v35 }
 0x296   : > { %1537 = vmatpush2.bf16.msra.mxu0 %v2955_v43 }
 0x297   : > { %1496 = vmatpush2.bf16.msra.mxu1 %v2958_v44 }
 0x30a   : > { %v888_v58 = vpop.xlane.xlu1 %887 }
 0x30b   : > { %v884_v59 = vpop.xlane.xlu0 %883 }
 0x30e   : > { %v890_v25 = vpop.xlane.xlu1 %889 }
 0x30f   : > { %v886_v26 = vpop.xlane.xlu0 %885 }
 0x312   : > { %v894_v31 = vpop.xlane.xlu1 %893 }
 0x313   : > { %v892_v32 = vpop.xlane.xlu0 %891  ;;  %v900_v37 = vmax.f32 %v886_v26, %v894_v31 }
 0x314   : > { %v899_v38 = vmax.f32 %v884_v59, %v892_v32 }
 0x316   : > { %v898_v39 = vpop.xlane.xlu1 %897  ;;  %v903_v45 = vmax.f32 %v899_v38, %v900_v37 }
 0x317   : > { %v902_v40 = vmax.f32 %v890_v25, %v898_v39  ;;  %v896_v41 = vpop.xlane.xlu0 %895 }
 0x318   : > { %v901_v42 = vmax.f32 %v888_v58, %v896_v41 }
 0x31a   : > { %v904_v46 = vmax.f32 %v901_v42, %v902_v40 }
 0x31c   : > { %v905_v15 = vmax.f32 %v903_v45, %v904_v46 }
 0x31e   : > { %v906_v47 = vsub.f32 %v884_v59, %v905_v15  ;;  %v907_v48 = vsub.f32 %v886_v26, %v905_v15  ;;  %v908_v49 = vsub.f32 %v888_v58, %v905_v15  ;;  %v909_v50 = vsub.f32 %v890_v25, %v905_v15 }
 0x31f   : > { %v910_v51 = vsub.f32 %v892_v32, %v905_v15  ;;  %v911_v52 = vsub.f32 %v894_v31, %v905_v15  ;;  %v912_v53 = vsub.f32 %v896_v41, %v905_v15  ;;  %v913_v57 = vsub.f32 %v898_v39, %v905_v15 }
 0x320   : > { %v914_v54 = vmul.f32 1.442695, %v906_v47  ;;  %v916_v55 = vmul.f32 1.442695, %v907_v48  ;;  %v918_v56 = vmul.f32 1.442695, %v908_v49 }
 0x321   : > { %v920_v60 = vmul.f32 1.442695, %v909_v50  ;;  %v922_v61 = vmul.f32 1.442695, %v910_v51  ;;  %v924_v62 = vmul.f32 1.442695, %v911_v52 }
 0x322   : > { %3101 = vpow2.f32 %v914_v54  ;;  %v926_v23 = vmul.f32 1.442695, %v912_v53  ;;  %v928_v27 = vmul.f32 1.442695, %v913_v57  ;;  %v3763_v58 = vand.u32 127, %v686_v0 }
 0x323   : > { %3103 = vpow2.f32 %v916_v55  ;;  %v3161_v0 = vld [vmem:[#allocation20 + $0x50] ss:$8 sps:$4 sm:$0xff] (%p731_p8)  }
 0x324   : > { %3105 = vpow2.f32 %v918_v56  ;;  %v942_v59 = vsub.s32 %v3763_v58, %v3635_v2 }
 0x325   : > { %3107 = vpow2.f32 %v920_v60 }
 0x326   : > { %3109 = vpow2.f32 %v922_v61  ;;  %v2959_v61 = vld [vmem:[#allocation17 + $0x184] ss:$16 sps:$4 sm:$0xff]  }
 0x327   : > { %3111 = vpow2.f32 %v924_v62  ;;  %v2961_v62 = vld [vmem:[#allocation17 + $0x188] ss:$16 sps:$4 sm:$0xff]   ;;  %1497 = vmatprep.subr.bf16.mxu1 %v2959_v61 }
 0x328   : > { %3113 = vpow2.f32 %v926_v23  ;;  %v2963_v23 = vld [vmem:[#allocation17 + $0x18c] ss:$16 sps:$4 sm:$0xff]   ;;  %v1061_v61 = vld [vmem:[%s3972_s28 + $0x10] sm:$0xff] }
 0x329   : > { %3115 = vpow2.f32 %v928_v27  ;;  %v2964_v27 = vld [vmem:[#allocation17 + $0x180] ss:$16 sps:$4 sm:$0xff]   ;;  %1538 = vmatprep.subr.bf16.mxu0 %v2963_v23 }
 0x32a   : > { %1498 = vmatpush2.bf16.msra.mxu1 %v2964_v27  ;;  %1539 = vmatpush2.bf16.msra.mxu0 %v2961_v62 }
 0x32f   : > { %v3102_v25 = vpop.eup %3101 }
 0x330   : > { %v3104_v26 = vpop.eup %3103  ;;  %v943_v28 = vrot.slane %v3102_v25, %v942_v59  ;;  %v2967_v25 = vld [vmem:[#allocation17 + $0x168] ss:$16 sps:$4 sm:$0xff]  }
 0x331   : > { %v3106_v29 = vpop.eup %3105  ;;  %v947_v30 = vrot.slane %v3104_v26, %v942_v59  ;;  %v2969_v26 = vld [vmem:[#allocation17 + $0x16c] ss:$16 sps:$4 sm:$0xff]  }
 0x332   : > { %v3108_v31 = vpop.eup %3107  ;;  %v951_v32 = vrot.slane %v3106_v29, %v942_v59  ;;  %1540 = vmatprep.subr.bf16.mxu0 %v2969_v26  ;;  %v1062_v26 = vld [vmem:[%s3972_s28 + $0x18] sm:$0xff] }
 0x333   : > { %v3110_v33 = vpop.eup %3109  ;;  %v955_v34 = vrot.slane %v3108_v31, %v942_v59  ;;  %v973_v35 = vsel %vm972_vm1, %v947_v30, %v943_v28  ;;  %v2970_v28 = vld [vmem:[#allocation17 + $0x160] ss:$16 sps:$4 sm:$0xff]   ;;  %1541 = vmatpush2.bf16.msra.mxu0 %v2967_v25  ;;  %v2971_v31 = vld [vmem:[#allocation17 + $0x144] ss:$16 sps:$4 sm:$0xff]  }
 0x334   : > { %v3112_v36 = vpop.eup %3111  ;;  %v959_v37 = vrot.slane %v3110_v33, %v942_v59  ;;  %v975_v38 = vsel %vm974_vm2, %v951_v32, %v973_v35  ;;  %v2975_v35 = vld [vmem:[#allocation17 + $0x14c] ss:$16 sps:$4 sm:$0xff]   ;;  %vm2386_vm2 = vcmask (%p731_p8), 7168  }
 0x335   : > { %v3114_v39 = vpop.eup %3113  ;;  %v963_v40 = vrot.slane %v3112_v36, %v942_v59  ;;  %v977_v41 = vsel %vm976_vm3, %v955_v34, %v975_v38  ;;  %v2973_v34 = vld [vmem:[#allocation17 + $0x148] ss:$16 sps:$4 sm:$0xff]   ;;  %v2976_v36 = vld [vmem:[#allocation17 + $0x140] ss:$16 sps:$4 sm:$0xff]   ;;  %1542 = vmatprep.subr.bf16.mxu0 %v2975_v35  ;;  %v2981_v38 = vld [vmem:[#allocation17 + $0x12c] ss:$16 sps:$4 sm:$0xff]  }
 0x336   : > { %v3116_v42 = vpop.eup %3115  ;;  %v967_v43 = vrot.slane %v3114_v39, %v942_v59  ;;  %v979_v44 = vsel %vm978_vm4, %v959_v37, %v977_v41  ;;  %v2977_v37 = vld [vmem:[#allocation17 + $0x124] ss:$16 sps:$4 sm:$0xff]   ;;  %v1047_v41 = vsub.s32 6, %v3635_v2  ;;  %vm2400_vm3 = vcmask (%p731_p8), 0  }
 0x337   : > { %v971_v45 = vrot.slane %v3116_v42, %v942_v59  ;;  %v981_v46 = vsel %vm980_vm5, %v963_v40, %v979_v44  ;;  %v2965_v59 = vld [vmem:[#allocation17 + $0x164] ss:$16 sps:$4 sm:$0xff]   ;;  %1543 = vmatpush2.bf16.msra.mxu0 %v2973_v34  ;;  %v2979_v42 = vld [vmem:[#allocation17 + $0x128] ss:$16 sps:$4 sm:$0xff]  }
 0x338   : > { %v983_v15 = vsel %vm982_vm6, %v967_v43, %v981_v46  ;;  %1499 = vmatprep.subr.bf16.mxu1 %v2965_v59  ;;  %v2982_v43 = vld [vmem:[#allocation17 + $0x120] ss:$16 sps:$4 sm:$0xff]   ;;  %1544 = vmatprep.subr.bf16.mxu0 %v2981_v38  ;;  %v1040_v46 = vsub.s32 5, %v3635_v2  ;;  %v1065_v35 = vld [vmem:[%s3972_s28 + $0x30] sm:$0xff] }
 0x339   : > { %v985_v47 = vsel %vm984_vm7, %v971_v45, %v983_v15  ;;  %1500 = vmatpush2.bf16.msra.mxu1 %v2970_v28  ;;  %v2983_v15 = vld [vmem:[#allocation17 + $0x104] ss:$16 sps:$4 sm:$0xff]  }
 0x33a   : > { %v987_v48 = vmul.f32 %v985_v47, %v3652_v7  ;;  %1501 = vmatprep.subr.bf16.mxu1 %v2971_v31  ;;  %v2985_v47 = vld [vmem:[#allocation17 + $0x108] ss:$16 sps:$4 sm:$0xff]   ;;  %v3168_v7 = vld [vmem:[#allocation20 + $0x24] ss:$8 sps:$4 sm:$0xff] (%p731_p8)  }
 0x33b   : > { %1545 = vmatpush2.bf16.msra.mxu0 %v2979_v42 }
 0x33c   : > { %v989_v49 = vsel %vm988_vm8, %v987_v48, 0.0 }
 0x33d   : > { %v990_v50 = vrot.slane %v989_v49, 4  ;;  %1502 = vmatpush2.bf16.msra.mxu1 %v2976_v36 }
 0x33e   : > { %1503 = vmatprep.subr.bf16.mxu1 %v2977_v37 }
 0x33f   : > { %v991_v51 = vadd.f32 %v990_v50, %v989_v49  ;;  %v2988_v49 = vld [vmem:[#allocation17 + $0x100] ss:$16 sps:$4 sm:$0xff]   ;;  %v1083_v50 = vpack.c.bf16 %v3473_v22, %v3473_v22  ;;  %v1059_v22 = vld [vmem:[%s3972_s28] sm:$0xff] }
 0x341   : > { %v992_v52 = vrot.slane %v991_v51, 2  ;;  %1504 = vmatpush2.bf16.msra.mxu1 %v2982_v43  ;;  %1507 = vmatprep.mubr.bf16.mxu1 %v1083_v50 }
 0x342   : > { %1505 = vmatprep.subr.bf16.mxu1 %v2983_v15  ;;  %1548 = vmatprep.mubr.bf16.mxu0 %v1083_v50  ;;  %v2989_v15 = vld [vmem:[#allocation19 + $0xe0] ss:$16 sps:$4 sm:$0xff]   ;;  %v3000_v50 = vld [vmem:[#allocation19 + $0xcc] ss:$16 sps:$4 sm:$0xff]  }
 0x343   : > { %v993_v53 = vadd.f32 %v992_v52, %v991_v51  ;;  %v2991_v51 = vld [vmem:[#allocation19 + $0xe4] ss:$16 sps:$4 sm:$0xff]  }
 0x345   : > { %v994_v54 = vrot.slane %v993_v53, 1  ;;  %1506 = vmatpush2.bf16.msra.mxu1 %v2988_v49  ;;  %v2997_v49 = vld [vmem:[#allocation19 + $0xc4] ss:$16 sps:$4 sm:$0xff]  }
 0x346   : > { %1975 = vmatprep.subr.bf16.mxu1 %v2991_v51  ;;  %v2995_v51 = vld [vmem:[#allocation19 + $0xc0] ss:$16 sps:$4 sm:$0xff]  }
 0x347   : > { %v995_v55 = vadd.f32 %v994_v54, %v993_v53  ;;  %v1054_v53 = vsub.s32 7, %v3635_v2  ;;  %v2994_v54 = vld [vmem:[#allocation19 + $0xec] ss:$16 sps:$4 sm:$0xff]  }
 0x349   : > { %vm996_vm9 = vcmp.eq.f32.partialorder %v995_v55, 0.0 }
 0x34a   : > { %v2498_v56 = vsel %vm996_vm9, 1.0, %v3500_v24  ;;  %v1033_v24 = vsub.s32 4, %v3635_v2  ;;  %v3162_v2 = vld [vmem:[#allocation20 + $0x44] ss:$8 sps:$4 sm:$0xff] (%p731_p8)  }
 0x34b   : > { %v999_v57 = vadd.f32 %v2498_v56, %v995_v55  ;;  %v1060_v56 = vld [vmem:[%s3972_s28 + $0x8] sm:$0xff] }
 0x34d   : > { %v1000_v60 = vadd.f32 1e-09, %v999_v57 }
 0x34f   : > { %3117 = vrcp.f32 %v1000_v60 }
 0x35c   : > { %v3118_v29 = vpop.eup %3117 }
 0x35d   : > { %v1002_v30 = vmul.f32 %v3118_v29, %v987_v48  ;;  %v2987_v48 = vld [vmem:[#allocation17 + $0x10c] ss:$16 sps:$4 sm:$0xff]   ;;  %v1063_v29 = vld [vmem:[%s3972_s28 + $0x20] sm:$0xff] }
 0x35e   : > { %1546 = vmatprep.subr.bf16.mxu0 %v2987_v48 }
 0x35f   : > { %v1013_v32 = vrot.slane %v1002_v30, %v3641_v4  ;;  %v1006_v33 = vrot.slane %v1002_v30, %v3638_v3  ;;  %v1020_v39 = vrot.slane %v1002_v30, %v3644_v5  ;;  %v1034_v40 = vrot.slane %v1002_v30, %v1033_v24  ;;  %1547 = vmatpush2.bf16.msra.mxu0 %v2985_v47  ;;  %v2992_v47 = vld [vmem:[#allocation19 + $0xe8] ss:$16 sps:$4 sm:$0xff]  }
 0x360   : > { %v1027_v44 = vrot.slane %v1002_v30, %v3647_v6  ;;  %v1048_v45 = vrot.slane %v1002_v30, %v1047_v41  ;;  %v1041_v52 = vrot.slane %v1002_v30, %v1040_v46  ;;  %2016 = vmatprep.subr.bf16.mxu0 %v2994_v54  ;;  %v1055_v55 = vrot.slane %v1002_v30, %v1054_v53  ;;  %v3003_v53 = vld [vmem:[#allocation19 + $0xa4] ss:$16 sps:$4 sm:$0xff]   ;;  %v3006_v54 = vld [vmem:[#allocation19 + $0xac] ss:$16 sps:$4 sm:$0xff]   ;;  %v3164_v5 = vld [vmem:[#allocation20 + $0x40] ss:$8 sps:$4 sm:$0xff] (%p731_p8)  }
 0x361   : > { %1015 = vbcast.lane.b32.xlu1 %v1013_v32, 256  ;;  %1008 = vbcast.lane.b32.xlu0 %v1006_v33, 256  ;;  %v1064_v32 = vld [vmem:[%s3972_s28 + $0x28] sm:$0xff] }
 0x362   :  { %v3167_v6 = vld [vmem:[#allocation20 + $0x30] ss:$8 sps:$4 sm:$0xff] (%p731_p8)  }
 0x365   : > { %1022 = vbcast.lane.b32.xlu1 %v1020_v39, 256  ;;  %1036 = vbcast.lane.b32.xlu0 %v1034_v40, 256  ;;  %v1066_v40 = vld [vmem:[%s3972_s28 + $0x38] sm:$0xff] }
 0x369   : > { %1029 = vbcast.lane.b32.xlu1 %v1027_v44, 256  ;;  %1050 = vbcast.lane.b32.xlu0 %v1048_v45, 256 }
 0x36d   : > { %1043 = vbcast.lane.b32.xlu1 %v1041_v52, 256  ;;  %v2998_v52 = vld [vmem:[#allocation19 + $0xc8] ss:$16 sps:$4 sm:$0xff]  }
 0x371   : > { %1057 = vbcast.lane.b32.xlu1 %v1055_v55, 256  ;;  %v3001_v55 = vld [vmem:[#allocation19 + $0xa0] ss:$16 sps:$4 sm:$0xff]  }
 0x3d3   : > { %v1016_v57 = vpop.permute.xlu1 %1015  ;;  %v1009_v60 = vpop.permute.xlu0 %1008 }
 0x3d4   : > { %v1068_v62 = vmul.f32 %v1060_v56, %v1016_v57  ;;  %v1067_v23 = vmul.f32 %v1059_v22, %v1009_v60  ;;  %v3004_v56 = vld [vmem:[#allocation19 + $0xa8] ss:$16 sps:$4 sm:$0xff]   ;;  %v3009_v57 = vld [vmem:[#allocation19 + $0x84] ss:$16 sps:$4 sm:$0xff]   ;;  %v3012_v22 = vld [vmem:[#allocation19 + $0x8c] ss:$16 sps:$4 sm:$0xff]  }
 0x3d5   : > { %v3007_v60 = vld [vmem:[#allocation19 + $0x80] ss:$16 sps:$4 sm:$0xff]  }
 0x3d6   : > { %v1075_v28 = vadd.f32 %v1068_v62, %v1067_v23  ;;  %v3015_v62 = vld [vmem:[#allocation19 + $0x64] ss:$16 sps:$4 sm:$0xff]   ;;  %v3018_v23 = vld [vmem:[#allocation19 + $0x6c] ss:$16 sps:$4 sm:$0xff]  }
 0x3d7   : > { %v1023_v27 = vpop.permute.xlu1 %1022  ;;  %v1037_v25 = vpop.permute.xlu0 %1036 }
 0x3d8   : > { %v1069_v59 = vmul.f32 %v1061_v61, %v1023_v27  ;;  %v1071_v33 = vmul.f32 %v1063_v29, %v1037_v25  ;;  %v3010_v61 = vld [vmem:[#allocation19 + $0x88] ss:$16 sps:$4 sm:$0xff]   ;;  %v3013_v27 = vld [vmem:[#allocation19 + $0x60] ss:$16 sps:$4 sm:$0xff]   ;;  %v3021_v25 = vld [vmem:[#allocation19 + $0x44] ss:$16 sps:$4 sm:$0xff]  }
 0x3d9   : > { %v3022_v29 = vld [vmem:[#allocation19 + $0x48] ss:$16 sps:$4 sm:$0xff]  }
 0x3da   : > { %v1076_v24 = vadd.f32 %v1075_v28, %v1069_v59  ;;  %v3016_v59 = vld [vmem:[#allocation19 + $0x68] ss:$16 sps:$4 sm:$0xff]   ;;  %v3019_v28 = vld [vmem:[#allocation19 + $0x40] ss:$16 sps:$4 sm:$0xff]  }
 0x3db   : > { %v1030_v30 = vpop.permute.xlu1 %1029  ;;  %v1051_v36 = vpop.permute.xlu0 %1050 }
 0x3dc   : > { %v1070_v31 = vmul.f32 %v1062_v26, %v1030_v30  ;;  %v1073_v41 = vmul.f32 %v1065_v35, %v1051_v36  ;;  %v3024_v26 = vld [vmem:[#allocation19 + $0x4c] ss:$16 sps:$4 sm:$0xff]   ;;  %v3027_v30 = vld [vmem:[#allocation19 + $0x24] ss:$16 sps:$4 sm:$0xff]   ;;  %v3031_v35 = vld [vmem:[#allocation19] ss:$16 sps:$4 sm:$0xff]  }
 0x3dd   : > { %v3034_v36 = vld [vmem:[#allocation19 + $0x8] ss:$16 sps:$4 sm:$0xff]  }
 0x3de   : > { %v1077_v34 = vadd.f32 %v1076_v24, %v1070_v31  ;;  %v3030_v24 = vld [vmem:[#allocation19 + $0x2c] ss:$16 sps:$4 sm:$0xff]   ;;  %v3025_v31 = vld [vmem:[#allocation19 + $0x20] ss:$16 sps:$4 sm:$0xff]  }
 0x3df   : > { %v1044_v37 = vpop.permute.xlu1 %1043 }
 0x3e0   : > { %v1072_v38 = vmul.f32 %v1064_v32, %v1044_v37  ;;  %v1078_v39 = vadd.f32 %v1077_v34, %v1071_v33  ;;  %v3028_v32 = vld [vmem:[#allocation19 + $0x28] ss:$16 sps:$4 sm:$0xff]   ;;  %v3033_v33 = vld [vmem:[#allocation19 + $0x4] ss:$16 sps:$4 sm:$0xff]   ;;  %v3036_v34 = vld [vmem:[#allocation19 + $0xc] ss:$16 sps:$4 sm:$0xff]  }
 0x3e1   : > { %v3039_v37 = vld [vmem:[#allocation19 + $0x1e4] ss:$16 sps:$4 sm:$0xff]  }
 0x3e2   : > { %v1079_v42 = vadd.f32 %v1078_v39, %v1072_v38  ;;  %v3042_v38 = vld [vmem:[#allocation19 + $0x1ec] ss:$16 sps:$4 sm:$0xff]   ;;  %v3037_v39 = vld [vmem:[#allocation19 + $0x1e0] ss:$16 sps:$4 sm:$0xff]  }
 0x3e3   : > { %v1058_v43 = vpop.permute.xlu1 %1057 }
 0x3e4   : > { %v1074_v44 = vmul.f32 %v1066_v40, %v1058_v43  ;;  %v1080_v45 = vadd.f32 %v1079_v42, %v1073_v41  ;;  %v3040_v40 = vld [vmem:[#allocation19 + $0x1e8] ss:$16 sps:$4 sm:$0xff]   ;;  %v3045_v41 = vld [vmem:[#allocation19 + $0x1c4] ss:$16 sps:$4 sm:$0xff]   ;;  %v3048_v42 = vld [vmem:[#allocation19 + $0x1cc] ss:$16 sps:$4 sm:$0xff]  }
 0x3e5   : > { %v3043_v43 = vld [vmem:[#allocation19 + $0x1c0] ss:$16 sps:$4 sm:$0xff]  }
 0x3e6   : > { %v1081_v46 = vadd.f32 %v1080_v45, %v1074_v44  ;;  %v3046_v44 = vld [vmem:[#allocation19 + $0x1c8] ss:$16 sps:$4 sm:$0xff]   ;;  %v3049_v45 = vld [vmem:[#allocation19 + $0x1a0] ss:$16 sps:$4 sm:$0xff]  }
 0x3e8   : > { %v1082_v48 = vpack.c.bf16 %v1081_v46, %v1081_v46  ;;  %v3051_v46 = vld [vmem:[#allocation19 + $0x1a4] ss:$16 sps:$4 sm:$0xff]  }
 0x3ea   : > { %1508 = vmatmul.mubr.bf16.vlgmr.msra.gmra.mxu1 %v1082_v48  ;;  %1549 = vmatmul.mubr.bf16.vlgmr.msra.gmra.mxu0 %v1082_v48  ;;  %v3057_v48 = vld [vmem:[#allocation19 + $0x184] ss:$16 sps:$4 sm:$0xff]  }
 0x3eb   : > { %1976 = vmatpush1.bf16.msra.mxu1 %v2989_v15  ;;  %2017 = vmatpush1.bf16.msra.mxu0 %v2992_v47  ;;  %v3052_v15 = vld [vmem:[#allocation19 + $0x1a8] ss:$16 sps:$4 sm:$0xff]   ;;  %v3054_v47 = vld [vmem:[#allocation19 + $0x1ac] ss:$16 sps:$4 sm:$0xff]  }
 0x3ec   : > { %1977 = vmatprep.subr.bf16.mxu1 %v2997_v49  ;;  %2018 = vmatprep.subr.bf16.mxu0 %v3000_v50  ;;  %v3060_v49 = vld [vmem:[#allocation19 + $0x18c] ss:$16 sps:$4 sm:$0xff]   ;;  %v1590_v50 = vpack.c.bf16 %v3465_v20, %v3465_v20  ;;  %v3067_v20 = vld [vmem:[#allocation19 + $0x140] ss:$16 sps:$4 sm:$0xff]  }
 0x3ee   : > { %2007 = vmatprep.mubr.bf16.mxu1 %v1590_v50  ;;  %2048 = vmatprep.mubr.bf16.mxu0 %v1590_v50 }
 0x3ef   : > { %1978 = vmatpush1.bf16.msra.mxu1 %v2995_v51  ;;  %2019 = vmatpush1.bf16.msra.mxu0 %v2998_v52  ;;  %v3055_v51 = vld [vmem:[#allocation19 + $0x180] ss:$16 sps:$4 sm:$0xff]   ;;  %v3058_v52 = vld [vmem:[#allocation19 + $0x188] ss:$16 sps:$4 sm:$0xff]  }
 0x3f0   : > { %1979 = vmatprep.subr.bf16.mxu1 %v3003_v53  ;;  %2020 = vmatprep.subr.bf16.mxu0 %v3006_v54  ;;  %v3063_v53 = vld [vmem:[#allocation19 + $0x164] ss:$16 sps:$4 sm:$0xff]   ;;  %v3066_v54 = vld [vmem:[#allocation19 + $0x16c] ss:$16 sps:$4 sm:$0xff]  }
 0x3f3   : > { %1980 = vmatpush1.bf16.msra.mxu1 %v3001_v55  ;;  %2021 = vmatpush1.bf16.msra.mxu0 %v3004_v56  ;;  %v3061_v55 = vld [vmem:[#allocation19 + $0x160] ss:$16 sps:$4 sm:$0xff]   ;;  %v3064_v56 = vld [vmem:[#allocation19 + $0x168] ss:$16 sps:$4 sm:$0xff]  }
 0x3f4   : > { %1981 = vmatprep.subr.bf16.mxu1 %v3009_v57  ;;  %2022 = vmatprep.subr.bf16.mxu0 %v3012_v22  ;;  %v3069_v57 = vld [vmem:[#allocation19 + $0x144] ss:$16 sps:$4 sm:$0xff]   ;;  %v3072_v22 = vld [vmem:[#allocation19 + $0x14c] ss:$16 sps:$4 sm:$0xff]  }
 0x3f7   : > { %1982 = vmatpush1.bf16.msra.mxu1 %v3007_v60  ;;  %2023 = vmatpush1.bf16.msra.mxu0 %v3010_v61  ;;  %v3070_v60 = vld [vmem:[#allocation19 + $0x148] ss:$16 sps:$4 sm:$0xff]   ;;  %v3075_v61 = vld [vmem:[#allocation19 + $0x124] ss:$16 sps:$4 sm:$0xff]  }
 0x3f8   : > { %1983 = vmatprep.subr.bf16.mxu1 %v3015_v62  ;;  %2024 = vmatprep.subr.bf16.mxu0 %v3018_v23  ;;  %v3078_v62 = vld [vmem:[#allocation19 + $0x12c] ss:$16 sps:$4 sm:$0xff]   ;;  %v3073_v23 = vld [vmem:[#allocation19 + $0x120] ss:$16 sps:$4 sm:$0xff]  }
 0x3fb   : > { %1984 = vmatpush1.bf16.msra.mxu1 %v3013_v27  ;;  %2025 = vmatpush1.bf16.msra.mxu0 %v3016_v59  ;;  %v3076_v27 = vld [vmem:[#allocation19 + $0x128] ss:$16 sps:$4 sm:$0xff]   ;;  %v3081_v59 = vld [vmem:[#allocation19 + $0x104] ss:$16 sps:$4 sm:$0xff]  }
 0x3fc   : > { %1985 = vmatprep.subr.bf16.mxu1 %v3021_v25  ;;  %2026 = vmatprep.subr.bf16.mxu0 %v3024_v26  ;;  %v3084_v25 = vld [vmem:[#allocation19 + $0x10c] ss:$16 sps:$4 sm:$0xff]   ;;  %v3079_v26 = vld [vmem:[#allocation19 + $0x100] ss:$16 sps:$4 sm:$0xff]  }
 0x3ff   : > { %1986 = vmatpush1.bf16.msra.mxu1 %v3019_v28  ;;  %2027 = vmatpush1.bf16.msra.mxu0 %v3022_v29  ;;  %v3082_v28 = vld [vmem:[#allocation19 + $0x108] ss:$16 sps:$4 sm:$0xff]  }
 0x400   : > { %1987 = vmatprep.subr.bf16.mxu1 %v3027_v30  ;;  %2028 = vmatprep.subr.bf16.mxu0 %v3030_v24  ;;  %v1087_v29 = vld [vmem:[%s1086_s3] sm:$0xff] }
 0x403   : > { %1988 = vmatpush1.bf16.msra.mxu1 %v3025_v31  ;;  %2029 = vmatpush1.bf16.msra.mxu0 %v3028_v32  ;;  %v1088_v31 = vld [vmem:[%s1086_s3 + $0x8] sm:$0xff] }
 0x404   : > { %1989 = vmatprep.subr.bf16.mxu1 %v3033_v33  ;;  %2030 = vmatprep.subr.bf16.mxu0 %v3036_v34 }
 0x407   : > { %1990 = vmatpush1.bf16.msra.mxu1 %v3031_v35  ;;  %2031 = vmatpush1.bf16.msra.mxu0 %v3034_v36 }
 0x408   : > { %1991 = vmatprep.subr.bf16.mxu1 %v3039_v37  ;;  %2032 = vmatprep.subr.bf16.mxu0 %v3042_v38 }
 0x40b   : > { %1992 = vmatpush2.bf16.msra.mxu1 %v3037_v39  ;;  %2033 = vmatpush2.bf16.msra.mxu0 %v3040_v40 }
 0x40c   : > { %1993 = vmatprep.subr.bf16.mxu1 %v3045_v41  ;;  %2034 = vmatprep.subr.bf16.mxu0 %v3048_v42 }
 0x40f   : > { %1994 = vmatpush2.bf16.msra.mxu1 %v3043_v43  ;;  %2035 = vmatpush2.bf16.msra.mxu0 %v3046_v44  ;;  %v1090_v44 = vld [vmem:[%s1086_s3 + $0x18] sm:$0xff] }
 0x410   : > { %1995 = vmatprep.subr.bf16.mxu1 %v3051_v46  ;;  %2036 = vmatprep.subr.bf16.mxu0 %v3054_v47  ;;  %v1089_v46 = vld [vmem:[%s1086_s3 + $0x10] sm:$0xff] }
 0x413   : > { %1996 = vmatpush2.bf16.msra.mxu1 %v3049_v45  ;;  %2037 = vmatpush2.bf16.msra.mxu0 %v3052_v15 }
 0x414   : > { %1997 = vmatprep.subr.bf16.mxu1 %v3057_v48  ;;  %2038 = vmatprep.subr.bf16.mxu0 %v3060_v49 }
 0x417   : > { %1998 = vmatpush2.bf16.msra.mxu1 %v3055_v51  ;;  %2039 = vmatpush2.bf16.msra.mxu0 %v3058_v52 }
 0x418   : > { %1999 = vmatprep.subr.bf16.mxu1 %v3063_v53  ;;  %2040 = vmatprep.subr.bf16.mxu0 %v3066_v54 }
 0x41b   : > { %2000 = vmatpush2.bf16.msra.mxu1 %v3061_v55  ;;  %2041 = vmatpush2.bf16.msra.mxu0 %v3064_v56 }
 0x41c   : > { %2001 = vmatprep.subr.bf16.mxu1 %v3069_v57  ;;  %2042 = vmatprep.subr.bf16.mxu0 %v3072_v22 }
 0x41f   : > { %2002 = vmatpush2.bf16.msra.mxu1 %v3067_v20  ;;  %2043 = vmatpush2.bf16.msra.mxu0 %v3070_v60 }
 0x420   : > { %2003 = vmatprep.subr.bf16.mxu1 %v3075_v61  ;;  %2044 = vmatprep.subr.bf16.mxu0 %v3078_v62 }
 0x423   : > { %2004 = vmatpush2.bf16.msra.mxu1 %v3073_v23  ;;  %2045 = vmatpush2.bf16.msra.mxu0 %v3076_v27 }
 0x424   : > { %2005 = vmatprep.subr.bf16.mxu1 %v3081_v59  ;;  %2046 = vmatprep.subr.bf16.mxu0 %v3084_v25 }
 0x427   : > { %2006 = vmatpush2.bf16.msra.mxu1 %v3079_v26  ;;  %2047 = vmatpush2.bf16.msra.mxu0 %v3082_v28 }
 0x4aa   : > { %v1509_v30 = vpop.f32.mrf.mxu1  ;;  %v1550_v24 = vpop.f32.mrf.mxu0 }
 0x4ab   : > { %v1557_v32 = vadd.f32 %v1509_v30, %v1087_v29  ;;  %v1559_v47 = vadd.f32 %v1550_v24, %v1089_v46 }
 0x4ac   : > { %v1511_v33 = vpop.f32.mrf.mxu1  ;;  %v1552_v34 = vpop.f32.mrf.mxu0 }
 0x4ad   : > { %v1561_v35 = vadd.f32 %v1557_v32, %v689_v10  ;;  %v1558_v36 = vadd.f32 %v1511_v33, %v1088_v31  ;;  %v1560_v45 = vadd.f32 %v1552_v34, %v1090_v44  ;;  %v1563_v50 = vadd.f32 %v1559_v47, %v697_v12  ;;  %v3173_v10 = vld [vmem:[#allocation20 + $0x10] ss:$8 sps:$4 sm:$0xff] (%p731_p8)   ;;  %v3176_v12 = vld [vmem:[#allocation20] ss:$8 sps:$4 sm:$0xff] (%p731_p8)  }
 0x4ae   : > { %v1513_v37 = vpop.f32.mrf.mxu1  ;;  %v1554_v38 = vpop.f32.mrf.mxu0 }
 0x4af   : > { %v2565_v39 = vmul.f32 -1.442695, %v1561_v35  ;;  %v1562_v40 = vadd.f32 %v1558_v36, %v693_v11  ;;  %v1564_v15 = vadd.f32 %v1560_v45, %v701_v13  ;;  %v3174_v11 = vld [vmem:[#allocation20 + $0x4] ss:$8 sps:$4 sm:$0xff] (%p731_p8)  }
 0x4b0   : > { %v1514_v41 = vpop.f32.mrf.mxu1  ;;  %v1555_v42 = vpop.f32.mrf.mxu0 }
 0x4b1   : > { %3119 = vpow2.f32 %v2565_v39  ;;  %v2566_v43 = vmul.f32 -1.442695, %v1562_v40  ;;  %v2567_v48 = vmul.f32 -1.442695, %v1564_v15 }
 0x4b3   : > { %3121 = vpow2.f32 %v2566_v43 }
 0x4b4   : > { %3123 = vpow2.f32 %v2567_v48 }
 0x4be   : > { %v3120_v49 = vpop.eup %3119 }
 0x4bf   : > { %v1568_v51 = vadd.f32 1.0, %v3120_v49 }
 0x4c0   : > { %v3122_v52 = vpop.eup %3121 }
 0x4c1   : > { %3125 = vrcp.f32 %v1568_v51  ;;  %v1574_v53 = vadd.f32 1.0, %v3122_v52  ;;  %v3124_v54 = vpop.eup %3123  ;;  %v3153_v51 = vld [vmem:[#allocation20 + $0x74] ss:$8 sps:$4 sm:$0xff] (%p731_p8)   ;;  %v3155_v52 = vld [vmem:[#allocation20 + $0x70] ss:$8 sps:$4 sm:$0xff] (%p731_p8)  }
 0x4c2   : > { %3127 = vtanh.f32 %v1563_v50  ;;  %v1581_v22 = vadd.f32 1.0, %v3124_v54  ;;  %2198 = vmatprep.subr.bf16.mxu0 (%p731_p8), %v3153_v51  ;;  %2742 = vmatprep.subr.bf16.mxu1 (%p731_p8), %v3153_v51  ;;  %v3158_v54 = vld [vmem:[#allocation20 + $0x60] ss:$8 sps:$4 sm:$0xff] (%p731_p8)  }
 0x4c3   : > { %3129 = vrcp.f32 %v1574_v53  ;;  %v3156_v53 = vld [vmem:[#allocation20 + $0x64] ss:$8 sps:$4 sm:$0xff] (%p731_p8)  }
 0x4c4   : > { %3131 = vrcp.f32 %v1581_v22 }
 0x4ce   : > { %v3126_v55 = vpop.eup %3125 }
 0x4cf   : > { %v3128_v56 = vpop.eup %3127 }
 0x4d0   : > { %v3130_v57 = vpop.eup %3129  ;;  %v1585_v20 = vmul.f32 %v3128_v56, %v3126_v55  ;;  %v3159_v55 = vld [vmem:[#allocation20 + $0x54] ss:$8 sps:$4 sm:$0xff] (%p731_p8)  }
 0x4d1   : > { %v1584_v60 = vmul.f32 %v3469_v21, %v3130_v57  ;;  %v3132_v61 = vpop.eup %3131 }
 0x4d3   : > { %v1586_v21 = vadd.f32 %v1585_v20, %v1584_v60  }
 0x4d5   : > { %3133 = vtanh.f32 %v1586_v21 }
 0x4e2   : > { %v3134_v62 = vpop.eup %3133 }
 0x4e3   : > { %v1588_v22 = vmul.f32 %v3134_v62, %v3132_v61  }
 0x4e5   : > { %v1589_v23 = vpack.c.bf16 %v1588_v22, %v1588_v22 }
 0x4e7   : > { %2008 = vmatmul.mubr.bf16.vlgmr.msra.gmra.mxu1 %v1589_v23  ;;  %2049 = vmatmul.mubr.bf16.vlgmr.msra.gmra.mxu0 %v1589_v23 }
 0x4e8   :  { %2230 = vmatprep.mubr.bf16.mxu0 (%p731_p8), %v3499_v1  ;;  %2240 = vmatprep.mubr.bf16.mxu1 (%p731_p8), %v3499_v1  ;;  %v3165_v1 = vld [vmem:[#allocation20 + $0x34] ss:$8 sps:$4 sm:$0xff] (%p731_p8)  }
 0x4e9   :  { %2199 = vmatpush1.bf16.msra.mxu0 (%p731_p8), %v3155_v52  ;;  %2750 = vmatpush1.bf16.msra.mxu1 (%p731_p8), %v3155_v52 }
 0x4ea   :  { %2200 = vmatprep.subr.bf16.mxu0 (%p731_p8), %v3156_v53  ;;  %2743 = vmatprep.subr.bf16.mxu1 (%p731_p8), %v3156_v53 }
 0x4ed   :  { %2201 = vmatpush1.bf16.msra.mxu0 (%p731_p8), %v3158_v54  ;;  %2751 = vmatpush1.bf16.msra.mxu1 (%p731_p8), %v3158_v54 }
 0x4ee   :  { %2202 = vmatprep.subr.bf16.mxu0 (%p731_p8), %v3159_v55  ;;  %2744 = vmatprep.subr.bf16.mxu1 (%p731_p8), %v3159_v55 }
 0x4f1   :  { %2203 = vmatpush1.bf16.msra.mxu0 (%p731_p8), %v3161_v0  ;;  %2752 = vmatpush1.bf16.msra.mxu1 (%p731_p8), %v3161_v0 }
 0x4f2   :  { %2204 = vmatprep.subr.bf16.mxu0 (%p731_p8), %v3162_v2  ;;  %2745 = vmatprep.subr.bf16.mxu1 (%p731_p8), %v3162_v2 }
 0x4f5   :  { %2205 = vmatpush1.bf16.msra.mxu0 (%p731_p8), %v3164_v5  ;;  %2753 = vmatpush1.bf16.msra.mxu1 (%p731_p8), %v3164_v5 }
 0x4f6   :  { %2206 = vmatprep.subr.bf16.mxu0 (%p731_p8), %v3165_v1  ;;  %2746 = vmatprep.subr.bf16.mxu1 (%p731_p8), %v3165_v1 }
 0x4f9   :  { %2207 = vmatpush1.bf16.msra.mxu0 (%p731_p8), %v3167_v6  ;;  %2754 = vmatpush1.bf16.msra.mxu1 (%p731_p8), %v3167_v6 }
 0x4fa   :  { %2208 = vmatprep.subr.bf16.mxu0 (%p731_p8), %v3168_v7  ;;  %2747 = vmatprep.subr.bf16.mxu1 (%p731_p8), %v3168_v7 }
 0x4fd   :  { %2209 = vmatpush1.bf16.msra.mxu0 (%p731_p8), %v3170_v8  ;;  %2755 = vmatpush1.bf16.msra.mxu1 (%p731_p8), %v3170_v8 }
 0x4fe   :  { %2210 = vmatprep.subr.bf16.mxu0 (%p731_p8), %v3171_v9  ;;  %2748 = vmatprep.subr.bf16.mxu1 (%p731_p8), %v3171_v9 }
 0x501   :  { %2211 = vmatpush1.bf16.msra.mxu0 (%p731_p8), %v3173_v10  ;;  %2756 = vmatpush1.bf16.msra.mxu1 (%p731_p8), %v3173_v10 }
 0x502   :  { %2212 = vmatprep.subr.bf16.mxu0 (%p731_p8), %v3174_v11  ;;  %2749 = vmatprep.subr.bf16.mxu1 (%p731_p8), %v3174_v11  ;;  %v2313_v11 = vadd.s32 (%p731_p8), 128, %v3763_v58 }
 0x505   :  { %2213 = vmatpush1.bf16.msra.mxu0 (%p731_p8), %v3176_v12  ;;  %2757 = vmatpush1.bf16.msra.mxu1 (%p731_p8), %v3176_v12 }
 0x5a7   : > { %v2009_v27 = vpop.f32.mrf.mxu1  ;;  %v2050_v59 = vpop.f32.mrf.mxu0 }
 0x5a8   : > { %v2010_v25 = vadd.f32 %v2009_v27, %v711_v16  ;;  %v2051_v38 = vadd.f32 %v2050_v59, %v719_v18 }
 0x5a9   : > { %v2011_v26 = vpop.f32.mrf.mxu1  ;;  %v2052_v28 = vpop.f32.mrf.mxu0 }
 0x5aa   : > { %v2632_v29 = vmul.f32 -1.442695, %v2010_v25  ;;  %v2012_v30 = vadd.f32 %v2011_v26, %v715_v17  ;;  %v2053_v35 = vadd.f32 %v2052_v28, %v723_v19 }
 0x5ab   : > { %v2013_v24 = vpop.f32.mrf.mxu1  ;;  %v2054_v31 = vpop.f32.mrf.mxu0 }
 0x5ac   : > { %3135 = vpow2.f32 %v2632_v29  ;;  %v2633_v32 = vmul.f32 -1.442695, %v2012_v30  ;;  %v2634_v36 = vmul.f32 -1.442695, %v2053_v35  ;;  %v2315_v30 = vld [vmem:[%s3962_s15 + $0x8] sm:$0xff] (%p731_p8)  ;;  %v2314_v24 = vld [vmem:[%s3962_s15] sm:$0xff] (%p731_p8) }
 0x5ad   : > { %v2014_v33 = vpop.f32.mrf.mxu1  ;;  %v2055_v34 = vpop.f32.mrf.mxu0 }
 0x5ae   : > { %3137 = vpow2.f32 %v2633_v32 }
 0x5af   : > { %3139 = vpow2.f32 %v2634_v36  ;;  %v2316_v36 = vld [vmem:[%s3962_s15 + $0x10] sm:$0xff] (%p731_p8) }
 0x5b9   : > { %v3136_v37 = vpop.eup %3135 }
 0x5ba   : > { %v2060_v39 = vadd.f32 1.0, %v3136_v37  ;;  %v2317_v37 = vld [vmem:[%s3962_s15 + $0x18] sm:$0xff] (%p731_p8) }
 0x5bb   : > { %v3138_v40 = vpop.eup %3137 }
 0x5bc   : > { %3141 = vrcp.f32 %v2060_v39  ;;  %v2066_v41 = vadd.f32 1.0, %v3138_v40  ;;  %v3140_v42 = vpop.eup %3139 }
 0x5bd   : > { %3143 = vtanh.f32 %v2051_v38  ;;  %v2073_v46 = vadd.f32 1.0, %v3140_v42 }
 0x5be   : > { %3145 = vrcp.f32 %v2066_v41 }
 0x5bf   : > { %3147 = vrcp.f32 %v2073_v46 }
 0x5c9   : > { %v3142_v43 = vpop.eup %3141 }
 0x5ca   : > { %v3144_v44 = vpop.eup %3143 }
 0x5cb   : > { %v3146_v45 = vpop.eup %3145  ;;  %v2077_v15 = vmul.f32 %v3144_v44, %v3142_v43 }
 0x5cc   : > { %v2076_v47 = vmul.f32 %v3461_v63, %v3146_v45  ;;  %v3148_v48 = vpop.eup %3147 }
 0x5ce   : > { %v2078_v63 = vadd.f32 %v2077_v15, %v2076_v47  }
 0x5d0   : > { %3149 = vtanh.f32 %v2078_v63  ;;  %v2106_v63 = vld [vmem:[%s3961_s14] sm:$0x3] (%p731_p8) }
 0x5d1   :  { %v2111_v21 = vrot.slane (%p731_p8), %v2106_v63, %v3638_v3  ;;  %v2115_v56 = vrot.slane (%p731_p8), %v2106_v63, %v3641_v4 }
 0x5dc   :  { %733 = sbr.rel (!%p731_p8) target bundleno = 397 (0x18d), region = 137 }
 0x5dd   : > { %v3150_v49 = vpop.eup %3149 }
 0x5de   : > { %v2080_v50 = vmul.f32 %v3150_v49, %v3148_v48  }
 0x5e0   : > { %2083 = vst [vmem:[%s2082_s6] sm:$0xff] %v2080_v50  ;;  %v3973_v20 = vmov %v2080_v50  ;;  %v3974_v15 = vmov %v2080_v50 }
 0x5e7   :  { %v2084_v13 = vld [vmem:[#allocation4] sm:$0xff]  ;;  %v2085_v14 = vld [vmem:[#allocation4 + $0x8] sm:$0xff]  ;;  %v2086_v16 = vld [vmem:[#allocation4 + $0x10] sm:$0xff] }
 0x5e8   :  { %v2087_v17 = vld [vmem:[#allocation4 + $0x18] sm:$0xff]  ;;  %v2088_v18 = vpack.c.bf16 %v2085_v14, %v2084_v13 }
 0x5e9   :  { %v2089_v19 = vpack.c.bf16 %v2087_v17, %v2086_v16  ;;  %v3502_v16 = vmov 0.0  }
 0x5ea   :  { %2231 = vmatmul.mubr.bf16.vlgmr.msra.gmra.mxu0 %v2088_v18 }
 0x5eb   :  { %2241 = vmatmul.mubr.bf16.vlgmr.msra.gmra.mxu1 %v2089_v19 }
 0x6aa   :  { %v2232_v57 = vpop.f32.mrf.mxu0 }
 0x6ab   :  { %v2242_v22 = vpop.f32.mrf.mxu1  ;;  %v3855_v20 = vadd.f32 %v2232_v57, %v2111_v21 }
 0x6ac   :  { %v2234_v60 = vpop.f32.mrf.mxu0  ;;  %v3857_v62 = vadd.f32 %v2242_v22, %v2111_v21 }
 0x6ad   :  { %v2244_v61 = vpop.f32.mrf.mxu1  ;;  %v3859_v23 = vadd.f32 %v2234_v60, %v2115_v56 }
 0x6ae   :  { %v3861_v27 = vadd.f32 %v2244_v61, %v2115_v56  ;;  %v2236_v59 = vpop.f32.mrf.mxu0 }
 0x6af   :  { %v3863_v25 = vadd.f32 %v2236_v59, %v2111_v21  ;;  %v2251_v4 = vmax.f32 %v3855_v20, %v3859_v23  ;;  %v2246_v31 = vpop.f32.mrf.mxu1 }
 0x6b0   :  { %v2257_v3 = vmax.f32 %v3857_v62, %v3861_v27  ;;  %v2238_v26 = vpop.f32.mrf.mxu0  ;;  %v3881_v34 = vadd.f32 %v2246_v31, %v2111_v21 }
 0x6b1   :  { %v3869_v28 = vadd.f32 %v2238_v26, %v2115_v56  ;;  %2252 = vmax.xlane.f32.xlu0 %v2251_v4  ;;  %v2248_v32 = vpop.f32.mrf.mxu1 }
 0x6b2   :  { %2258 = vmax.xlane.f32.xlu1 %v2257_v3  ;;  %v3879_v33 = vadd.f32 %v2248_v32, %v2115_v56 }
 0x6b3   :  { %v2254_v29 = vmax.f32 %v3863_v25, %v3869_v28 }
 0x6b4   :  { %v2260_v35 = vmax.f32 %v3881_v34, %v3879_v33 }
 0x6b5   :  { %2255 = vmax.xlane.f32.xlu0 %v2254_v29 }
 0x6c3   :  { %2322 = vperm.xlu1 %3152, %v2315_v30  }
 0x6cb   :  { %2319 = vperm.xlu0 %3151, %v2314_v24  }
 0x6e7   :  { %2261 = vmax.xlane.f32.xlu1 %v2260_v35 }
 0x6f8   :  { %2325 = vperm.xlu1 %3152, %v2316_v36  }
 0x6fc   :  { %2328 = vperm.xlu1 %3152, %v2317_v37  }
 0x73a   :  { %v3893_v39 = vpop.xlane.xlu0 %2252 }
 0x73b   :  { %v3891_v38 = vpop.xlane.xlu1 %2258  ;;  %v2263_v42 = vsub.f32 %v3855_v20, %v3893_v39  ;;  %v2264_v43 = vsub.f32 %v3859_v23, %v3893_v39 }
 0x73c   :  { %v2267_v40 = vsub.f32 %v3857_v62, %v3891_v38  ;;  %v2268_v41 = vsub.f32 %v3861_v27, %v3891_v38 }
 0x73d   :  { %v2271_v46 = vmul.f32 1.442695, %v2263_v42  ;;  %v2273_v15 = vmul.f32 1.442695, %v2264_v43 }
 0x73e   :  { %v2279_v44 = vmul.f32 1.442695, %v2267_v40  ;;  %v2281_v45 = vmul.f32 1.442695, %v2268_v41  ;;  %v3903_v47 = vpop.xlane.xlu0 %2255 }
 0x73f   :  { %v2265_v48 = vsub.f32 %v3863_v25, %v3903_v47  ;;  %v2266_v49 = vsub.f32 %v3869_v28, %v3903_v47  ;;  %v2323_v7 = vpop.permute.xlu1 %2322 }
 0x740   :  { %3177 = vpow2.f32 %v2279_v44  ;;  %vm2332_vm14 = vcmp.eq.s32.totalorder %v3763_v58, %v2323_v7  ;;  %vm2333_vm15 = vcmp.eq.s32.totalorder %v2313_v11, %v2323_v7 }
 0x741   :  { %3179 = vpow2.f32 %v2281_v45  ;;  %v2275_v50 = vmul.f32 1.442695, %v2265_v48  ;;  %v2277_v51 = vmul.f32 1.442695, %v2266_v49  ;;  %v2655_v26 = vsel %vm2333_vm15, 1.0, %v3502_v16 }
 0x742   :  { %3181 = vpow2.f32 %v2271_v46  ;;  %v2357_v24 = vmul.f32 %v2655_v26, %v3869_v28 }
 0x743   :  { %3183 = vpow2.f32 %v2273_v15  ;;  %v2379_v15 = vld [vmem:[%s3963_s16 + $0x8] sm:$0xff] }
 0x744   :  { %3185 = vpow2.f32 %v2275_v50 }
 0x745   :  { %3187 = vpow2.f32 %v2277_v51 }
 0x746   :  { %v2320_v56 = vpop.permute.xlu0 %2319 }
 0x747   :  { %vm2330_vm12 = vcmp.eq.s32.totalorder %v3763_v58, %v2320_v56  ;;  %vm2331_vm13 = vcmp.eq.s32.totalorder %v2313_v11, %v2320_v56 }
 0x748   :  { %v2652_v57 = vsel %vm2330_vm12, 1.0, %v3502_v16  ;;  %v2653_v22 = vsel %vm2331_vm13, 1.0, %v3502_v16 }
 0x749   :  { %v2354_v4 = vmul.f32 %v2652_v57, %v3855_v20 }
 0x74d   :  { %v3178_v52 = vpop.eup %3177 }
 0x74e   :  { %v3180_v53 = vpop.eup %3179 }
 0x74f   :  { %v3182_v54 = vpop.eup %3181  ;;  %v2293_v6 = vadd.f32 %v3180_v53, %v3178_v52  ;;  %v2378_v52 = vld [vmem:[%s3963_s16] sm:$0xff] }
 0x750   :  { %v3184_v55 = vpop.eup %3183 }
 0x751   :  { %v3186_v0 = vpop.eup %3185  ;;  %v2287_v2 = vadd.f32 %v3184_v55, %v3182_v54 }
 0x752   :  { %v3188_v5 = vpop.eup %3187 }
 0x753   :  { %2288 = vadd.xlane.f32.xlu1 %v2287_v2  ;;  %v2290_v1 = vadd.f32 %v3188_v5, %v3186_v0 }
 0x755   :  { %2291 = vadd.xlane.f32.xlu0 %v2290_v1 }
 0x757   :  { %2294 = vadd.xlane.f32.xlu1 %v2293_v6 }
 0x770   :  { %v3909_v8 = vpop.xlane.xlu1 %2261 }
 0x771   :  { %v2269_v9 = vsub.f32 %v3881_v34, %v3909_v8  ;;  %v2270_v10 = vsub.f32 %v3879_v33, %v3909_v8 }
 0x773   :  { %v2283_v12 = vmul.f32 1.442695, %v2269_v9  ;;  %v2285_v13 = vmul.f32 1.442695, %v2270_v10 }
 0x774   :  { %v2326_v14 = vpop.permute.xlu1 %2325 }
 0x775   :  { %3189 = vpow2.f32 %v2283_v12  ;;  %vm2334_vm10 = vcmp.eq.s32.totalorder %v3763_v58, %v2326_v14  ;;  %vm2335_vm11 = vcmp.eq.s32.totalorder %v2313_v11, %v2326_v14 }
 0x776   :  { %3191 = vpow2.f32 %v2285_v13  ;;  %v2656_v17 = vsel %vm2334_vm10, 1.0, %v3502_v16  ;;  %v2657_v18 = vsel %vm2335_vm11, 1.0, %v3502_v16 }
 0x777   :  { %v2358_v19 = vmul.f32 %v2656_v17, %v3857_v62  ;;  %v2359_v63 = vmul.f32 %v2657_v18, %v3861_v27  ;;  %v2355_v62 = vmul.f32 %v2653_v22, %v3859_v23  ;;  %v2654_v27 = vsel %vm2332_vm14, 1.0, %v3502_v16 }
 0x778   :  { %v2329_v59 = vpop.permute.xlu1 %2328  ;;  %v2356_v30 = vmul.f32 %v2654_v27, %v3863_v25 }
 0x779   :  { %v2368_v21 = vadd.f32 %v2359_v63, %v2358_v19  ;;  %vm2336_vm0 = vcmp.eq.s32.totalorder %v3763_v58, %v2329_v59  ;;  %vm2337_vm1 = vcmp.eq.s32.totalorder %v2313_v11, %v2329_v59  ;;  %v2362_v29 = vadd.f32 %v2355_v62, %v2354_v4 }
 0x77a   :  { %v2658_v31 = vsel %vm2336_vm0, 1.0, %v3502_v16  ;;  %v2659_v32 = vsel %vm2337_vm1, 1.0, %v3502_v16  ;;  %v2365_v35 = vadd.f32 %v2357_v24, %v2356_v30 }
 0x77b   :  { %2369 = vadd.xlane.f32.xlu0 %v2368_v21  ;;  %v2360_v36 = vmul.f32 %v2658_v31, %v3881_v34  ;;  %v2361_v20 = vmul.f32 %v2659_v32, %v3879_v33 }
 0x77d   :  { %v2371_v23 = vadd.f32 %v2361_v20, %v2360_v36 }
 0x782   :  { %v3190_v60 = vpop.eup %3189 }
 0x783   :  { %v3192_v61 = vpop.eup %3191 }
 0x784   :  { %v2296_v3 = vadd.f32 %v3192_v61, %v3190_v60 }
 0x786   :  { %2297 = vadd.xlane.f32.xlu1 %v2296_v3 }
 0x78a   :  { %2363 = vadd.xlane.f32.xlu1 %v2362_v29 }
 0x78e   :  { %2366 = vadd.xlane.f32.xlu1 %v2365_v35 }
 0x792   :  { %2372 = vadd.xlane.f32.xlu1 %v2371_v23 }
 0x7dc   :  { %v2289_v37 = vpop.xlane.xlu1 %2288 }
 0x7dd   :  { %3193 = vlog2.f32 %v2289_v37 }
 0x7de   :  { %v2292_v58 = vpop.xlane.xlu0 %2291 }
 0x7df   :  { %3195 = vlog2.f32 %v2292_v58 }
 0x7e0   :  { %v2295_v40 = vpop.xlane.xlu1 %2294 }
 0x7e1   :  { %3197 = vlog2.f32 %v2295_v40 }
 0x7ea   :  { %v3194_v25 = vpop.eup %3193 }
 0x7eb   :  { %v2300_v42 = vmul.f32 0.6931472, %v3194_v25 }
 0x7ec   :  { %v3196_v41 = vpop.eup %3195 }
 0x7ed   :  { %v2302_v43 = vmul.f32 0.6931472, %v3196_v41  ;;  %v2307_v33 = vadd.f32 %v2300_v42, %v3893_v39 }
 0x7ee   :  { %v3198_v44 = vpop.eup %3197 }
 0x7ef   :  { %v2304_v34 = vmul.f32 0.6931472, %v3198_v44  ;;  %v2308_v46 = vadd.f32 %v2302_v43, %v3903_v47  ;;  %v2380_v47 = vld [vmem:[%s3963_s16 + $0x10] sm:$0xff] }
 0x7f1   :  { %v2309_v53 = vadd.f32 %v2304_v34, %v3891_v38  ;;  %v2381_v38 = vld [vmem:[%s3963_s16 + $0x18] sm:$0xff]  ;;  %s3405_s16 = scalar_lea.vmem %s2409_s29, 32 }
 0x7f2   :  { %p3407_p11 = scmp.lt.s32.totalorder %s3405_s16, %s3401_s30 }
 0x7f4   :  { %p3408_p12 = por %p3407_p11, %p3406_p10 }
 0x7f6   :  { %p3409_p13 = pnand %p3408_p12, %p3402_p9 }
 0x804   :  { %v2370_v51 = vpop.xlane.xlu0 %2369 }
 0x805   :  { %v2376_v55 = vsub.f32 %v2309_v53, %v2370_v51 }
 0x807   :  { %v2384_v1 = vmul.f32 %v2380_v47, %v2376_v55 }
 0x809   :  { %v2390_v12 = vsel %vm2386_vm2, %v2384_v1, 0.0 }
 0x80f   :  { %v2298_v28 = vpop.xlane.xlu1 %2297 }
 0x810   :  { %3199 = vlog2.f32 %v2298_v28 }
 0x813   :  { %v2364_v45 = vpop.xlane.xlu1 %2363 }
 0x814   :  { %v2374_v49 = vsub.f32 %v2307_v33, %v2364_v45 }
 0x816   :  { %v2382_v0 = vmul.f32 %v2378_v52, %v2374_v49 }
 0x817   :  { %v2367_v48 = vpop.xlane.xlu1 %2366 }
 0x818   :  { %v2375_v50 = vsub.f32 %v2308_v46, %v2367_v48  ;;  %v2387_v6 = vsel %vm2386_vm2, %v2382_v0, 0.0 }
 0x81a   :  { %v2383_v54 = vmul.f32 %v2379_v15, %v2375_v50 }
 0x81b   :  { %v2373_v10 = vpop.xlane.xlu1 %2372 }
 0x81c   :  { %v2388_v5 = vsel %vm2386_vm2, %v2383_v54, 0.0 }
 0x81d   :  { %v3200_v39 = vpop.eup %3199  ;;  %v2389_v9 = vadd.f32 %v2388_v5, %v2387_v6 }
 0x81e   :  { %v2306_v2 = vmul.f32 0.6931472, %v3200_v39 }
 0x81f   :  { %v2391_v14 = vadd.f32 %v2390_v12, %v2389_v9 }
 0x820   :  { %v2310_v7 = vadd.f32 %v2306_v2, %v3909_v8 }
 0x822   :  { %v2377_v11 = vsub.f32 %v2310_v7, %v2373_v10 }
 0x824   :  { %v2385_v13 = vmul.f32 %v2381_v38, %v2377_v11 }
 0x826   :  { %v2392_v16 = vsel %vm2386_vm2, %v2385_v13, 0.0 }
 0x827   :  { %v2393_v17 = vadd.f32 %v2392_v16, %v2391_v14 }
 0x829   :  { %v2394_v18 = vrot.slane %v2393_v17, 4 }
 0x82b   :  { %v2395_v19 = vadd.f32 %v2394_v18, %v2393_v17 }
 0x82d   :  { %v2396_v63 = vrot.slane %v2395_v19, 2 }
 0x82f   :  { %v2397_v21 = vadd.f32 %v2396_v63, %v2395_v19 }
 0x831   :  { %v2398_v56 = vrot.slane %v2397_v21, 1 }
 0x833   :  { %v2399_v8 = vadd.f32 %v2398_v56, %v2397_v21 }
 0x835   :  { %2401 = vst.msk [vmem:[#allocation22] sm:$0x1] %vm2400_vm3, %v2399_v8 }
 0x836   :  { %3412 = shalt.err (!%p3409_p13)
}
 0x837   :  { %2411 = dma.vmem_to_hbm [thread:$0]  %s2409_s29, 16, %s3964_s17, [#allocation7]  }
 0x838   :  { %3457 = dma.done.wait [#allocation7], 16  }
 0x839   :  { %3458 = vsyncadd [#allocation7], 4294967280 }
 0x83a   :  { %2415 = vsyncpa [#allocation6], 1 }
 0x83b   :  { %2416 = vsyncpa [#allocation9], 1 }
 0x83c   :  { %2417 = vsyncpa [#allocation12], 1 }
 0x83d   :  { %2418 = vsyncpa [#allocation15], 1 }
 0x83e   :  { %2419 = vsyncpa [#allocation18], 1 }
 0x83f   :  { %2420 = vsyncpa [#allocation21], 1 }
 0x840   :  { %2421 = vsyncpa [#allocation7], 1 }

</bundles_post_ra>
